<compile_context>
chip_gen: v7x
topology: tpu7x:2x2x1
jax: 0.10.0
libtpu: 0.0.40
codegen_flags: <defaults>
</compile_context>

<pallas_src>
import jax
import jax.numpy as jnp
from jax.experimental import pallas as pl
from jax.experimental.pallas import tpu as pltpu

# Small test-sized versions of HIDDEN_SIZE=768, MAX_LENGTH=128, TRANSE_EMB_DIM=100
HIDDEN = 32
MAX_LEN = 16
TRANSE_DIM = 16
NUM_REL = 16          # relation count R
R_TILE = 8            # relations per grid step (must divide NUM_REL, multiple of 8)
THRESHOLDS = (0.6, 0.6, 0.6, 0.6)


# --------------------------------------------------------------------------- #
# Fused attention + separable-head kernel.
# Grid = (B, R // R_TILE), both axes "parallel" (no cross-step state).
#
# Per grid step (one batch row b, one R tile):
#   e   = tanh(frg[r] + f_W_x(x)[l])          (Rt, L, H)  bf16
#   v   = sum_h e * V                          (Rt, L)     f32
#   A   = softmax over L (lane axis)           (Rt, L)
#   C   = A @ x                                (Rt, H)
#   cols= C @ [start|end] head weights         (Rt, 2)
#   out[k, r, l] = cols[r, k] + rows[k, l]     (lane-dense (Rt, L) stores)
# rows (per-token part of the separable heads, biases folded in) are precomputed
# in XLA, as are frg = f_W_r(rel) + f_W_g(hg) and the x projections.
# --------------------------------------------------------------------------- #
def _brask_attn_kernel(x_ref, fwx_ref, bwx_ref, frg_ref, brg_ref, rows_ref,
                       vw_ref, wf2_ref, wb2_ref, out_ref):
    x = x_ref[0]                                   # (L, H) bf16
    fwx = fwx_ref[0]                               # (L, H) bf16  = f_W_x(x)
    bwx = bwx_ref[0]                               # (L, H) bf16  = b_W_x(x)
    frg = frg_ref[0].astype(jnp.bfloat16)          # (Rt, H)      = f_W_r(rel)+f_W_g(hg)
    brg = brg_ref[0].astype(jnp.bfloat16)
    L, H = x.shape

    # bf16 add + tanh chain, (Rt, L, H): H on lanes, L on sublanes, Rt outer.
    f_e = jnp.tanh(frg[:, None, :] + fwx[None, :, :])
    b_e = jnp.tanh(brg[:, None, :] + bwx[None, :, :])

    # V reduction over H (V bias dropped: softmax over L is shift-invariant, exact no-op).
    # TODO(synk): the perf review asks for this reduction on the MXU; the relayouts
    # that needs ((Rt*L,1)->(Rt,L) reshape or width-1 lane concats) are not robustly
    # lowerable here, so it stays a VPU multiply + lane reduce in f32.
    v_row = vw_ref[...].astype(jnp.float32).reshape(1, 1, H)
    f_v = jnp.sum(f_e.astype(jnp.float32) * v_row, axis=-1)       # (Rt, L) lane-dense
    b_v = jnp.sum(b_e.astype(jnp.float32) * v_row, axis=-1)

    def softmax_lane(s):
        # NOTE: like the PyTorch reference, no sequence-length/padding mask is applied.
        m = jnp.max(s, axis=-1, keepdims=True)
        p = jnp.exp(s - m)
        return p * pl.reciprocal(jnp.sum(p, axis=-1, keepdims=True), approx=True)

    f_A = softmax_lane(f_v).astype(jnp.bfloat16)                   # (Rt, L)
    b_A = softmax_lane(b_v).astype(jnp.bfloat16)

    # A is already (Rt, L): no transpose before the MXU pass.
    f_C = jnp.dot(f_A, x, preferred_element_type=jnp.float32)      # (Rt, H)
    b_C = jnp.dot(b_A, x, preferred_element_type=jnp.float32)

    # relation-side (column) part of the separable heads (biases live in `rows`).
    # Kept as two tiny matmuls (no in-kernel concat) for lowering robustness; MXU idle.
    f_cols = jnp.dot(f_C.astype(jnp.bfloat16), wf2_ref[...],
                     preferred_element_type=jnp.float32)           # (Rt, 2)
    b_cols = jnp.dot(b_C.astype(jnp.bfloat16), wb2_ref[...],
                     preferred_element_type=jnp.float32)

    rows = rows_ref[0]                                             # (4, L) f32
    out_ref[0, 0] = f_cols[:, 0:1] + rows[0:1, :]                  # f_tail_s
    out_ref[0, 1] = f_cols[:, 1:2] + rows[1:2, :]                  # f_tail_e
    out_ref[0, 2] = b_cols[:, 0:1] + rows[2:3, :]                  # b_head_s
    out_ref[0, 3] = b_cols[:, 1:2] + rows[3:4, :]                  # b_head_e


def brask_attention(token_embs, fw_x, bw_x, frg, brg, rows, v_w, w_f2, w_b2):
    B, L, H = token_embs.shape
    R = frg.shape[1]
    assert R % R_TILE == 0
    nr = R // R_TILE
    bf16 = jnp.bfloat16
    const = lambda b, r: (0, 0)
    return pl.pallas_call(
        _brask_attn_kernel,
        out_shape=jax.ShapeDtypeStruct((B, 4, R, L), jnp.float32),
        grid=(B, nr),
        in_specs=[
            pl.BlockSpec((1, L, H), lambda b, r: (b, 0, 0)),        # x               (bf16)
            pl.BlockSpec((1, L, H), lambda b, r: (b, 0, 0)),        # f_W_x(x)        (bf16)
            pl.BlockSpec((1, L, H), lambda b, r: (b, 0, 0)),        # b_W_x(x)        (bf16)
            pl.BlockSpec((1, R_TILE, H), lambda b, r: (b, r, 0)),   # frg             (f32)
            pl.BlockSpec((1, R_TILE, H), lambda b, r: (b, r, 0)),   # brg             (f32)
            pl.BlockSpec((1, 4, L), lambda b, r: (b, 0, 0)),        # head rows       (f32)
            pl.BlockSpec((1, H), const),                            # V weight        (bf16, tiny)
            pl.BlockSpec((H, 2), const),                            # [f_start_tail|f_end_tail]
            pl.BlockSpec((H, 2), const),                            # [b_start_head|b_end_head]
        ],
        out_specs=pl.BlockSpec((1, 4, R_TILE, L), lambda b, r: (b, 0, r, 0)),
        compiler_params=pltpu.CompilerParams(
            dimension_semantics=("parallel", "parallel")),
    )(token_embs.astype(bf16), fw_x.astype(bf16), bw_x.astype(bf16),
      frg, brg, rows,
      v_w.astype(bf16), w_f2.astype(bf16), w_b2.astype(bf16))


# --------------------------------------------------------------------------- #
# Pure-JAX port of extract_first_embeddings_opt (greedy start/end matching).
# TODO(synk): the data-dependent greedy span pairing (Python loops + a used-end
# set) has no clean Pallas equivalent; implemented with lax.fori_loop + vmap and a
# monotone min-end pointer, which can differ from the set-based greedy on
# interleaved spans.
# --------------------------------------------------------------------------- #
def extract_first_embeddings(token_embs, start_probs, end_probs, threshold):
    B, L, H = token_embs.shape
    start_mask = start_probs > threshold
    end_mask = end_probs > threshold
    pos = jnp.arange(L)

    def per_example(emb, smask, emask):
        cum = jnp.cumsum(emb, axis=0)

        def body(s, carry):
            min_end, j, padded, mask = carry
            is_start = smask[s]
            lo = jnp.maximum(s, min_end)
            cand = emask & (pos >= lo)
            has_end = jnp.any(cand)
            e = jnp.argmax(cand).astype(jnp.int32)          # first unused end >= s
            found = is_start & has_end
            prev = jnp.where(s == 0, jnp.zeros((H,), emb.dtype),
                             cum[jnp.maximum(s - 1, 0)])
            denom = jnp.maximum(e - s + 1, 1).astype(emb.dtype)   # clamp: no inf/NaN
            span_emb = (cum[e] - prev) / denom
            padded = padded.at[j].set(jnp.where(found, span_emb, padded[j]))
            mask = mask.at[j].set(mask[j] | found)
            j = j + found.astype(jnp.int32)
            min_end = jnp.where(found, e + 1, min_end)
            return (min_end, j, padded, mask)

        init = (jnp.int32(0), jnp.int32(0),
                jnp.zeros((L, H), emb.dtype), jnp.zeros((L,), jnp.bool_))
        _, _, padded, mask = jax.lax.fori_loop(0, L, body, init)
        return padded, mask

    return jax.vmap(per_example)(token_embs, start_mask, end_mask)


# --------------------------------------------------------------------------- #
# Deterministic parameter init (PyTorch nn.Linear default: U(-1/sqrt(in), +...))
# Weights stored pre-transposed so every projection is x @ W.
# --------------------------------------------------------------------------- #
def init_params(key):
    keys = jax.random.split(key, 48)
    it = iter(keys)

    def linear(in_dim, out_dim):
        bound = float(in_dim) ** -0.5
        w = jax.random.uniform(next(it), (in_dim, out_dim), jnp.float32, -bound, bound)
        b = jax.random.uniform(next(it), (out_dim,), jnp.float32, -bound, bound)
        return w, b

    p = {}
    # buffers (synthetic stand-ins for the .npz files)
    p['rel_transe'] = jax.random.normal(next(it), (NUM_REL, TRANSE_DIM), jnp.float32)
    p['rel_embs'] = jax.random.normal(next(it), (NUM_REL, HIDDEN), jnp.float32)
    p['r_proj_w'], p['r_proj_b'] = linear(TRANSE_DIM, HIDDEN)

    # token-level heads -> (H,4): [f_start_head, f_end_head, b_start_tail, b_end_tail]
    ws, bs = [], []
    for _ in range(4):
        w, b = linear(HIDDEN, 1)
        ws.append(w); bs.append(b)
    p['w4'] = jnp.concatenate(ws, axis=1)
    p['b4'] = jnp.concatenate(bs)

    # HxH projections (all hoisted to XLA): global/relation/pad/x-side
    for name in ('fg', 'fr', 'bg', 'br', 'fh', 'bt', 'fx', 'bx', 'fx2', 'bx2'):
        w, b = linear(HIDDEN, HIDDEN)
        p[f'w_{name}'] = w
        p[f'b_{name}'] = b

    # V (bias dropped: exact no-op under softmax over L)
    w, _ = linear(HIDDEN, 1)
    p['v_w'] = w.T                                              # (1, H)

    # H->1 heads applied to Hijk, stacked per direction (used both for the XLA
    # "rows" matmul and, cast to bf16, for the in-kernel "cols" matmul)
    w1, b1 = linear(HIDDEN, 1); w2, b2 = linear(HIDDEN, 1)
    p['w_f2'] = jnp.concatenate([w1, w2], axis=1)               # [f_start_tail|f_end_tail]
    p['b_f2'] = jnp.concatenate([b1, b2])
    w1, b1 = linear(HIDDEN, 1); w2, b2 = linear(HIDDEN, 1)
    p['w_b2'] = jnp.concatenate([w1, w2], axis=1)               # [b_start_head|b_end_head]
    p['b_b2'] = jnp.concatenate([b1, b2])
    return p


# --------------------------------------------------------------------------- #
# Forward pass (mirrors BRASKModel.forward)
# --------------------------------------------------------------------------- #
def brask_forward(params, h_gs, token_embs):
    x = token_embs                                               # (B, L, H) f32

    # tiny span-logit heads: plain XLA ((L,H)@(H,4) is a poor MXU shape)
    logits4 = x @ params['w4'] + params['b4']                    # (B, L, 4)
    probs = jax.nn.sigmoid(logits4)
    f_head_s, f_head_e = logits4[..., 0:1], logits4[..., 1:2]
    b_tail_s, b_tail_e = logits4[..., 2:3], logits4[..., 3:4]

    f_pad, f_mask = extract_first_embeddings(x, probs[..., 0], probs[..., 1],
                                             THRESHOLDS[0])
    b_pad, b_mask = extract_first_embeddings(x, probs[..., 2], probs[..., 3],
                                             THRESHOLDS[1])

    # ---- hoisted per-batch-row projections (were the pl.when(r==0) block) ----
    fw_x = x @ params['w_fx'] + params['b_fx']                   # f_W_x(x)
    bw_x = x @ params['w_bx'] + params['b_bx']                   # b_W_x(x)
    f_hw = (f_pad @ params['w_fh'] + params['b_fh']) * f_mask[..., None].astype(x.dtype)
    b_tw = (b_pad @ params['w_bt'] + params['b_bt']) * b_mask[..., None].astype(x.dtype)
    f_base = f_hw + (x @ params['w_fx2'] + params['b_fx2']) + x  # f_Hik + x
    b_base = b_tw + (x @ params['w_bx2'] + params['b_bx2']) + x  # b_Hik + x
    f_rows = f_base @ params['w_f2'] + params['b_f2']            # (B, L, 2)
    b_rows = b_base @ params['w_b2'] + params['b_b2']
    rows = jnp.concatenate([jnp.swapaxes(f_rows, 1, 2),
                            jnp.swapaxes(b_rows, 1, 2)], axis=1)  # (B, 4, L) lane-dense

    # relation + global-sentence projections, pre-summed (hoisted out of the kernel)
    f_rel = params['rel_embs']
    b_rel = params['rel_transe'] @ params['r_proj_w'] + params['r_proj_b']
    frg = (f_rel @ params['w_fr'] + params['b_fr'])[None, :, :] \
        + (h_gs @ params['w_fg'] + params['b_fg'])[:, None, :]   # (B, R, H)
    brg = (b_rel @ params['w_br'] + params['b_br'])[None, :, :] \
        + (h_gs @ params['w_bg'] + params['b_bg'])[:, None, :]

    stacked = brask_attention(x, fw_x, bw_x, frg, brg, rows,
                              params['v_w'], params['w_f2'], params['w_b2'])  # (B,4,R,L)

    # lane-dense (R, L) kernel layout -> reference (B, L, R) layout
    fts = jnp.swapaxes(stacked[:, 0], 1, 2)
    fte = jnp.swapaxes(stacked[:, 1], 1, 2)
    bhs = jnp.swapaxes(stacked[:, 2], 1, 2)
    bhe = jnp.swapaxes(stacked[:, 3], 1, 2)

    return {
        'forward': {'head_s': f_head_s, 'head_e': f_head_e,
                    'tail_s': fts, 'tail_e': fte},
        'backward': {'tail_s': b_tail_s, 'tail_e': b_tail_e,
                     'head_s': bhs, 'head_e': bhe},
    }


if __name__ == "__main__":
    key = jax.random.PRNGKey(0)
    pk, k1, k2 = jax.random.split(key, 3)
    params = init_params(pk)

    B = 2
    h_gs = jax.random.normal(k1, (B, HIDDEN), jnp.float32)                 # ds_batch['h_gs']
    token_embs = jax.random.normal(k2, (B, MAX_LEN, HIDDEN), jnp.float32)  # ds_batch['embs']

    out = jax.jit(brask_forward)(params, h_gs, token_embs)
    jax.block_until_ready(out)

    assert out['forward']['head_s'].shape == (B, MAX_LEN, 1)
    assert out['forward']['tail_s'].shape == (B, MAX_LEN, NUM_REL)
    assert out['backward']['tail_s'].shape == (B, MAX_LEN, 1)
    assert out['backward']['head_e'].shape == (B, MAX_LEN, NUM_REL)
    print("KERNEL_OK")
</pallas_src>

<mosaic_0001>
module attributes {stable_mosaic.version = 11 : i64} {
  func.func @_brask_attn_kernel(%arg0: i32, %arg1: i32, %arg2: memref<1x16x32xbf16, #tpu.memory_space<vmem>>, %arg3: memref<1x16x32xbf16, #tpu.memory_space<vmem>>, %arg4: memref<1x16x32xbf16, #tpu.memory_space<vmem>>, %arg5: memref<1x8x32xf32, #tpu.memory_space<vmem>>, %arg6: memref<1x8x32xf32, #tpu.memory_space<vmem>>, %arg7: memref<1x4x16xf32, #tpu.memory_space<vmem>>, %arg8: memref<1x32xbf16, #tpu.memory_space<vmem>>, %arg9: memref<32x2xbf16, #tpu.memory_space<vmem>>, %arg10: memref<32x2xbf16, #tpu.memory_space<vmem>>, %arg11: memref<1x4x8x16xf32, #tpu.memory_space<vmem>>) attributes {dimension_semantics = [#tpu.dimension_semantics<parallel>, #tpu.dimension_semantics<parallel>], iteration_bounds = array<i64: 2, 2>, scalar_prefetch = 0 : i64, scratch_operands = 0 : i64, tpu.core_type = #tpu.core_type<tc>, window_params = [{transform_indices = @transform_0, window_bounds = array<i64: 1, 16, 32>}, {transform_indices = @transform_1, window_bounds = array<i64: 1, 16, 32>}, {transform_indices = @transform_2, window_bounds = array<i64: 1, 16, 32>}, {transform_indices = @transform_3, window_bounds = array<i64: 1, 8, 32>}, {transform_indices = @transform_4, window_bounds = array<i64: 1, 8, 32>}, {transform_indices = @transform_5, window_bounds = array<i64: 1, 4, 16>}, {pipeline_mode = #tpu.pipeline_mode<synchronous>, transform_indices = @transform_6, window_bounds = array<i64: 1, 32>}, {pipeline_mode = #tpu.pipeline_mode<synchronous>, transform_indices = @transform_7, window_bounds = array<i64: 32, 2>}, {pipeline_mode = #tpu.pipeline_mode<synchronous>, transform_indices = @transform_8, window_bounds = array<i64: 32, 2>}, {transform_indices = @transform_9, window_bounds = array<i64: 1, 4, 8, 16>}]} {
    %c0 = arith.constant 0 : index
    %c0_0 = arith.constant 0 : index
    %c0_1 = arith.constant 0 : index
    %0 = vector.load %arg2[%c0, %c0_0, %c0_1] : memref<1x16x32xbf16, #tpu.memory_space<vmem>>, vector<1x16x32xbf16>
    %1 = vector.shape_cast %0 : vector<1x16x32xbf16> to vector<16x32xbf16>
    %c0_2 = arith.constant 0 : index
    %c0_3 = arith.constant 0 : index
    %c0_4 = arith.constant 0 : index
    %2 = vector.load %arg3[%c0_2, %c0_3, %c0_4] : memref<1x16x32xbf16, #tpu.memory_space<vmem>>, vector<1x16x32xbf16>
    %3 = vector.shape_cast %2 : vector<1x16x32xbf16> to vector<16x32xbf16>
    %c0_5 = arith.constant 0 : index
    %c0_6 = arith.constant 0 : index
    %c0_7 = arith.constant 0 : index
    %4 = vector.load %arg4[%c0_5, %c0_6, %c0_7] : memref<1x16x32xbf16, #tpu.memory_space<vmem>>, vector<1x16x32xbf16>
    %5 = vector.shape_cast %4 : vector<1x16x32xbf16> to vector<16x32xbf16>
    %c0_8 = arith.constant 0 : index
    %c0_9 = arith.constant 0 : index
    %c0_10 = arith.constant 0 : index
    %6 = vector.load %arg5[%c0_8, %c0_9, %c0_10] : memref<1x8x32xf32, #tpu.memory_space<vmem>>, vector<1x8x32xf32>
    %7 = vector.shape_cast %6 : vector<1x8x32xf32> to vector<8x32xf32>
    %8 = arith.truncf %7 : vector<8x32xf32> to vector<8x32xbf16>
    %c0_11 = arith.constant 0 : index
    %c0_12 = arith.constant 0 : index
    %c0_13 = arith.constant 0 : index
    %9 = vector.load %arg6[%c0_11, %c0_12, %c0_13] : memref<1x8x32xf32, #tpu.memory_space<vmem>>, vector<1x8x32xf32>
    %10 = vector.shape_cast %9 : vector<1x8x32xf32> to vector<8x32xf32>
    %11 = arith.truncf %10 : vector<8x32xf32> to vector<8x32xbf16>
    %12 = vector.shape_cast %8 : vector<8x32xbf16> to vector<8x1x32xbf16>
    %13 = vector.shape_cast %3 : vector<16x32xbf16> to vector<1x16x32xbf16>
    %14 = vector.broadcast %12 : vector<8x1x32xbf16> to vector<8x16x32xbf16>
    %15 = vector.broadcast %13 : vector<1x16x32xbf16> to vector<8x16x32xbf16>
    %16 = arith.addf %14, %15 : vector<8x16x32xbf16>
    %17 = math.tanh %16 : vector<8x16x32xbf16>
    %18 = vector.shape_cast %11 : vector<8x32xbf16> to vector<8x1x32xbf16>
    %19 = vector.shape_cast %5 : vector<16x32xbf16> to vector<1x16x32xbf16>
    %20 = vector.broadcast %18 : vector<8x1x32xbf16> to vector<8x16x32xbf16>
    %21 = vector.broadcast %19 : vector<1x16x32xbf16> to vector<8x16x32xbf16>
    %22 = arith.addf %20, %21 : vector<8x16x32xbf16>
    %23 = math.tanh %22 : vector<8x16x32xbf16>
    %c0_14 = arith.constant 0 : index
    %c0_15 = arith.constant 0 : index
    %24 = vector.load %arg8[%c0_14, %c0_15] : memref<1x32xbf16, #tpu.memory_space<vmem>>, vector<1x32xbf16>
    %25 = arith.extf %24 : vector<1x32xbf16> to vector<1x32xf32>
    %26 = vector.shape_cast %25 : vector<1x32xf32> to vector<1x1x32xf32>
    %27 = arith.extf %17 : vector<8x16x32xbf16> to vector<8x16x32xf32>
    %28 = vector.broadcast %26 : vector<1x1x32xf32> to vector<8x16x32xf32>
    %29 = arith.mulf %27, %28 : vector<8x16x32xf32>
    %cst = arith.constant dense<0.000000e+00> : vector<8x16xf32>
    %30 = vector.multi_reduction <add>, %29, %cst [2] : vector<8x16x32xf32> to vector<8x16xf32>
    %31 = arith.extf %23 : vector<8x16x32xbf16> to vector<8x16x32xf32>
    %32 = vector.broadcast %26 : vector<1x1x32xf32> to vector<8x16x32xf32>
    %33 = arith.mulf %31, %32 : vector<8x16x32xf32>
    %cst_16 = arith.constant dense<0.000000e+00> : vector<8x16xf32>
    %34 = vector.multi_reduction <add>, %33, %cst_16 [2] : vector<8x16x32xf32> to vector<8x16xf32>
    %cst_17 = arith.constant dense<0xFF800000> : vector<8xf32>
    %35 = vector.multi_reduction <maximumf>, %30, %cst_17 [1] : vector<8x16xf32> to vector<8xf32>
    %36 = vector.shape_cast %35 : vector<8xf32> to vector<8x1xf32>
    %37 = vector.broadcast %36 : vector<8x1xf32> to vector<8x16xf32>
    %38 = arith.subf %30, %37 : vector<8x16xf32>
    %39 = math.exp %38 : vector<8x16xf32>
    %cst_18 = arith.constant dense<0.000000e+00> : vector<8xf32>
    %40 = vector.multi_reduction <add>, %39, %cst_18 [1] : vector<8x16xf32> to vector<8xf32>
    %41 = vector.shape_cast %40 : vector<8xf32> to vector<8x1xf32>
    %42 = tpu.reciprocal %41 {approx = true} : vector<8x1xf32> -> vector<8x1xf32>
    %43 = vector.broadcast %42 : vector<8x1xf32> to vector<8x16xf32>
    %44 = arith.mulf %39, %43 : vector<8x16xf32>
    %45 = arith.truncf %44 : vector<8x16xf32> to vector<8x16xbf16>
    %cst_19 = arith.constant dense<0xFF800000> : vector<8xf32>
    %46 = vector.multi_reduction <maximumf>, %34, %cst_19 [1] : vector<8x16xf32> to vector<8xf32>
    %47 = vector.shape_cast %46 : vector<8xf32> to vector<8x1xf32>
    %48 = vector.broadcast %47 : vector<8x1xf32> to vector<8x16xf32>
    %49 = arith.subf %34, %48 : vector<8x16xf32>
    %50 = math.exp %49 : vector<8x16xf32>
    %cst_20 = arith.constant dense<0.000000e+00> : vector<8xf32>
    %51 = vector.multi_reduction <add>, %50, %cst_20 [1] : vector<8x16xf32> to vector<8xf32>
    %52 = vector.shape_cast %51 : vector<8xf32> to vector<8x1xf32>
    %53 = tpu.reciprocal %52 {approx = true} : vector<8x1xf32> -> vector<8x1xf32>
    %54 = vector.broadcast %53 : vector<8x1xf32> to vector<8x16xf32>
    %55 = arith.mulf %50, %54 : vector<8x16xf32>
    %56 = arith.truncf %55 : vector<8x16xf32> to vector<8x16xbf16>
    %cst_21 = arith.constant dense<0.000000e+00> : vector<8x32xf32>
    %57 = tpu.matmul %45, %1, %cst_21 {dimension_numbers = #tpu.dot_dimension_numbers<[1], [0], [0], [1], [0, 0, 1, 1], [], []>} : vector<8x16xbf16>, vector<16x32xbf16>, vector<8x32xf32> -> vector<8x32xf32>
    %cst_22 = arith.constant dense<0.000000e+00> : vector<8x32xf32>
    %58 = tpu.matmul %56, %1, %cst_22 {dimension_numbers = #tpu.dot_dimension_numbers<[1], [0], [0], [1], [0, 0, 1, 1], [], []>} : vector<8x16xbf16>, vector<16x32xbf16>, vector<8x32xf32> -> vector<8x32xf32>
    %59 = arith.truncf %57 : vector<8x32xf32> to vector<8x32xbf16>
    %c0_23 = arith.constant 0 : index
    %c0_24 = arith.constant 0 : index
    %60 = vector.load %arg9[%c0_23, %c0_24] : memref<32x2xbf16, #tpu.memory_space<vmem>>, vector<32x2xbf16>
    %cst_25 = arith.constant dense<0.000000e+00> : vector<8x2xf32>
    %61 = tpu.matmul %59, %60, %cst_25 {dimension_numbers = #tpu.dot_dimension_numbers<[1], [0], [0], [1], [0, 0, 1, 1], [], []>} : vector<8x32xbf16>, vector<32x2xbf16>, vector<8x2xf32> -> vector<8x2xf32>
    %62 = arith.truncf %58 : vector<8x32xf32> to vector<8x32xbf16>
    %c0_26 = arith.constant 0 : index
    %c0_27 = arith.constant 0 : index
    %63 = vector.load %arg10[%c0_26, %c0_27] : memref<32x2xbf16, #tpu.memory_space<vmem>>, vector<32x2xbf16>
    %cst_28 = arith.constant dense<0.000000e+00> : vector<8x2xf32>
    %64 = tpu.matmul %62, %63, %cst_28 {dimension_numbers = #tpu.dot_dimension_numbers<[1], [0], [0], [1], [0, 0, 1, 1], [], []>} : vector<8x32xbf16>, vector<32x2xbf16>, vector<8x2xf32> -> vector<8x2xf32>
    %c0_29 = arith.constant 0 : index
    %c0_30 = arith.constant 0 : index
    %c0_31 = arith.constant 0 : index
    %65 = vector.load %arg7[%c0_29, %c0_30, %c0_31] : memref<1x4x16xf32, #tpu.memory_space<vmem>>, vector<1x4x16xf32>
    %66 = vector.shape_cast %65 : vector<1x4x16xf32> to vector<4x16xf32>
    %67 = vector.extract_strided_slice %61 {offsets = [0, 0], sizes = [8, 1], strides = [1, 1]} : vector<8x2xf32> to vector<8x1xf32>
    %68 = vector.extract_strided_slice %66 {offsets = [0, 0], sizes = [1, 16], strides = [1, 1]} : vector<4x16xf32> to vector<1x16xf32>
    %69 = vector.broadcast %67 : vector<8x1xf32> to vector<8x16xf32>
    %70 = vector.broadcast %68 : vector<1x16xf32> to vector<8x16xf32>
    %71 = arith.addf %69, %70 : vector<8x16xf32>
    %c0_32 = arith.constant 0 : index
    %c0_33 = arith.constant 0 : index
    %c0_34 = arith.constant 0 : index
    %c0_35 = arith.constant 0 : index
    %72 = vector.load %arg11[%c0_32, %c0_33, %c0_34, %c0_35] : memref<1x4x8x16xf32, #tpu.memory_space<vmem>>, vector<1x1x8x16xf32>
    %73 = vector.shape_cast %72 : vector<1x1x8x16xf32> to vector<8x16xf32>
    %74 = vector.shape_cast %71 : vector<8x16xf32> to vector<1x1x8x16xf32>
    tpu.vector_store %arg11[%c0_32, %c0_33, %c0_34, %c0_35], %74 {strides = array<i32>} : memref<1x4x8x16xf32, #tpu.memory_space<vmem>>, vector<1x1x8x16xf32>,
    %75 = vector.extract_strided_slice %61 {offsets = [0, 1], sizes = [8, 1], strides = [1, 1]} : vector<8x2xf32> to vector<8x1xf32>
    %76 = vector.extract_strided_slice %66 {offsets = [1, 0], sizes = [1, 16], strides = [1, 1]} : vector<4x16xf32> to vector<1x16xf32>
    %77 = vector.broadcast %75 : vector<8x1xf32> to vector<8x16xf32>
    %78 = vector.broadcast %76 : vector<1x16xf32> to vector<8x16xf32>
    %79 = arith.addf %77, %78 : vector<8x16xf32>
    %c0_36 = arith.constant 0 : index
    %c1 = arith.constant 1 : index
    %c0_37 = arith.constant 0 : index
    %c0_38 = arith.constant 0 : index
    %80 = vector.load %arg11[%c0_36, %c1, %c0_37, %c0_38] : memref<1x4x8x16xf32, #tpu.memory_space<vmem>>, vector<1x1x8x16xf32>
    %81 = vector.shape_cast %80 : vector<1x1x8x16xf32> to vector<8x16xf32>
    %82 = vector.shape_cast %79 : vector<8x16xf32> to vector<1x1x8x16xf32>
    tpu.vector_store %arg11[%c0_36, %c1, %c0_37, %c0_38], %82 {strides = array<i32>} : memref<1x4x8x16xf32, #tpu.memory_space<vmem>>, vector<1x1x8x16xf32>,
    %83 = vector.extract_strided_slice %64 {offsets = [0, 0], sizes = [8, 1], strides = [1, 1]} : vector<8x2xf32> to vector<8x1xf32>
    %84 = vector.extract_strided_slice %66 {offsets = [2, 0], sizes = [1, 16], strides = [1, 1]} : vector<4x16xf32> to vector<1x16xf32>
    %85 = vector.broadcast %83 : vector<8x1xf32> to vector<8x16xf32>
    %86 = vector.broadcast %84 : vector<1x16xf32> to vector<8x16xf32>
    %87 = arith.addf %85, %86 : vector<8x16xf32>
    %c0_39 = arith.constant 0 : index
    %c2 = arith.constant 2 : index
    %c0_40 = arith.constant 0 : index
    %c0_41 = arith.constant 0 : index
    %88 = vector.load %arg11[%c0_39, %c2, %c0_40, %c0_41] : memref<1x4x8x16xf32, #tpu.memory_space<vmem>>, vector<1x1x8x16xf32>
    %89 = vector.shape_cast %88 : vector<1x1x8x16xf32> to vector<8x16xf32>
    %90 = vector.shape_cast %87 : vector<8x16xf32> to vector<1x1x8x16xf32>
    tpu.vector_store %arg11[%c0_39, %c2, %c0_40, %c0_41], %90 {strides = array<i32>} : memref<1x4x8x16xf32, #tpu.memory_space<vmem>>, vector<1x1x8x16xf32>,
    %91 = vector.extract_strided_slice %64 {offsets = [0, 1], sizes = [8, 1], strides = [1, 1]} : vector<8x2xf32> to vector<8x1xf32>
    %92 = vector.extract_strided_slice %66 {offsets = [3, 0], sizes = [1, 16], strides = [1, 1]} : vector<4x16xf32> to vector<1x16xf32>
    %93 = vector.broadcast %91 : vector<8x1xf32> to vector<8x16xf32>
    %94 = vector.broadcast %92 : vector<1x16xf32> to vector<8x16xf32>
    %95 = arith.addf %93, %94 : vector<8x16xf32>
    %c0_42 = arith.constant 0 : index
    %c3 = arith.constant 3 : index
    %c0_43 = arith.constant 0 : index
    %c0_44 = arith.constant 0 : index
    %96 = vector.load %arg11[%c0_42, %c3, %c0_43, %c0_44] : memref<1x4x8x16xf32, #tpu.memory_space<vmem>>, vector<1x1x8x16xf32>
    %97 = vector.shape_cast %96 : vector<1x1x8x16xf32> to vector<8x16xf32>
    %98 = vector.shape_cast %95 : vector<8x16xf32> to vector<1x1x8x16xf32>
    tpu.vector_store %arg11[%c0_42, %c3, %c0_43, %c0_44], %98 {strides = array<i32>} : memref<1x4x8x16xf32, #tpu.memory_space<vmem>>, vector<1x1x8x16xf32>,
    return
  }
  func.func @transform_0(%arg0: i32, %arg1: i32) -> (i32, i32, i32) {
    %c0_i32 = arith.constant 0 : i32
    %c0_i32_0 = arith.constant 0 : i32
    %c0_i32_1 = arith.constant 0 : i32
    return %arg0, %c0_i32, %c0_i32_0 : i32, i32, i32
  }
  func.func @transform_1(%arg0: i32, %arg1: i32) -> (i32, i32, i32) {
    %c0_i32 = arith.constant 0 : i32
    %c0_i32_0 = arith.constant 0 : i32
    %c0_i32_1 = arith.constant 0 : i32
    return %arg0, %c0_i32, %c0_i32_0 : i32, i32, i32
  }
  func.func @transform_2(%arg0: i32, %arg1: i32) -> (i32, i32, i32) {
    %c0_i32 = arith.constant 0 : i32
    %c0_i32_0 = arith.constant 0 : i32
    %c0_i32_1 = arith.constant 0 : i32
    return %arg0, %c0_i32, %c0_i32_0 : i32, i32, i32
  }
  func.func @transform_3(%arg0: i32, %arg1: i32) -> (i32, i32, i32) {
    %c0_i32 = arith.constant 0 : i32
    %c0_i32_0 = arith.constant 0 : i32
    return %arg0, %arg1, %c0_i32 : i32, i32, i32
  }
  func.func @transform_4(%arg0: i32, %arg1: i32) -> (i32, i32, i32) {
    %c0_i32 = arith.constant 0 : i32
    %c0_i32_0 = arith.constant 0 : i32
    return %arg0, %arg1, %c0_i32 : i32, i32, i32
  }
  func.func @transform_5(%arg0: i32, %arg1: i32) -> (i32, i32, i32) {
    %c0_i32 = arith.constant 0 : i32
    %c0_i32_0 = arith.constant 0 : i32
    %c0_i32_1 = arith.constant 0 : i32
    return %arg0, %c0_i32, %c0_i32_0 : i32, i32, i32
  }
  func.func @transform_6(%arg0: i32, %arg1: i32) -> (i32, i32) {
    %c0_i32 = arith.constant 0 : i32
    %c0_i32_0 = arith.constant 0 : i32
    %c0_i32_1 = arith.constant 0 : i32
    return %c0_i32, %c0_i32_0 : i32, i32
  }
  func.func @transform_7(%arg0: i32, %arg1: i32) -> (i32, i32) {
    %c0_i32 = arith.constant 0 : i32
    %c0_i32_0 = arith.constant 0 : i32
    %c0_i32_1 = arith.constant 0 : i32
    return %c0_i32, %c0_i32_0 : i32, i32
  }
  func.func @transform_8(%arg0: i32, %arg1: i32) -> (i32, i32) {
    %c0_i32 = arith.constant 0 : i32
    %c0_i32_0 = arith.constant 0 : i32
    %c0_i32_1 = arith.constant 0 : i32
    return %c0_i32, %c0_i32_0 : i32, i32
  }
  func.func @transform_9(%arg0: i32, %arg1: i32) -> (i32, i32, i32, i32) {
    %c0_i32 = arith.constant 0 : i32
    %c0_i32_0 = arith.constant 0 : i32
    %c0_i32_1 = arith.constant 0 : i32
    return %arg0, %c0_i32, %arg1, %c0_i32_0 : i32, i32, i32, i32
  }
}

</mosaic_0001>

<bundles_post_ra>
// kernel: custom-call.20
= control target key start
LH: loop header
LB: loop body
LE: loop exit
PB: predicated region body
PF: predicated region fallthrough
CT: control target
= control target key end

     0   :  { %s6_s0 = inlined_call_operand.vmem [shape: s32[2], index: 0, kind: output, shape index: {}]  }

// kernel: brask_forward.1
= control target key start
LH: loop header
LB: loop body
LE: loop exit
PB: predicated region body
PF: predicated region fallthrough
CT: control target
= control target key end

     0   :  { %s3749_s0 = inlined_call_operand.vmem [shape: bf16[2,16,32], index: 0, kind: input, shape index: {}]   ;;  %s3750_s1 = inlined_call_operand.vmem [shape: bf16[2,16,32], index: 1, kind: input, shape index: {}]   ;;  %s3751_s2 = inlined_call_operand.vmem [shape: bf16[2,16,32], index: 2, kind: input, shape index: {}]   ;;  %s3752_s3 = inlined_call_operand.vmem [shape: f32[2,16,32], index: 3, kind: input, shape index: {}]   ;;  %s3753_s4 = inlined_call_operand.vmem [shape: f32[2,16,32], index: 4, kind: input, shape index: {}]   ;;  %s3754_s5 = inlined_call_operand.vmem [shape: f32[2,4,16], index: 5, kind: input, shape index: {}]   ;;  %s3755_s6 = inlined_call_operand.vmem [shape: bf16[1,32], index: 6, kind: input, shape index: {}]   ;;  %s3756_s7 = inlined_call_operand.vmem [shape: bf16[32,2], index: 7, kind: input, shape index: {}]   ;;  %s3757_s8 = inlined_call_operand.vmem [shape: bf16[32,2], index: 8, kind: input, shape index: {}]   ;;  %s3758_s9 = inlined_call_operand.vmem [shape: f32[2,4,16,16], index: 9, kind: output, shape index: {}]  }
   0x1   :  { %3781 = sst [smem:[#allocation24_spill]] %s3758_s9 }
   0x2   :  { %s2875_s30 = smov 0   ;;  %s2877_s10 = smov 0  }
   0x3   :  { %s2879_s11 = smov 0   ;;  %s2881_s12 = smov 0  }
   0x4   :  { %s2883_s13 = smov 0   ;;  %s2885_s14 = smov 0  }
   0x5   :  { %s2887_s15 = smov 0  }
   0x6 LB: > { %3782 = sst [smem:[#allocation3_spill]] %s2798_s10  ;;  %s28_s16 = sadd.s32 1, %s2810_s13  ;;  %s2818_s15 = sphi %s2887_s15, %s19_s15   ;;  %s2814_s14 = sphi %s2885_s14, %s3825_s14   ;;  %s2810_s13 = sphi %s2883_s13, %s3824_s13   ;;  %s2806_s12 = sphi %s2881_s12, %s3823_s12   ;;  %s2802_s11 = sphi %s2879_s11, %s3822_s11   ;;  %s2798_s10 = sphi %s2877_s10, %s3821_s10   ;;  %s2794_s30 = sphi %s2875_s30, %s3820_s30  }
   0x7   : > { %3783 = sst [smem:[#allocation4_spill]] %s2810_s13  ;;  %p29_p0 = scmp.ge.s32.totalorder %s28_s16, 2 }
   0x8   : > { %3784 = sst [smem:[#allocation5_spill]] %s2814_s14  ;;  %s31_s17 = sadd.s32 1, %s2814_s14 }
   0x9   : > { %3785 = sst [smem:[#allocation6_spill]] %s2818_s15  ;;  %s2507_s18 = sadd.s32 4294967295, %s2818_s15  }
   0xa   : > { %p273_p1 = scmp.ne.s32.totalorder %s2798_s10, %s2794_s30  ;;  %s3827_s16 = smov (%p29_p0, %s28_s16), 0 }
   0xb   : > { %3786 = sst [smem:[#allocation7_spill]] %s3827_s16  ;;  %s3829_s17 = smov (!%p29_p0, %s31_s17), %s2814_s14 }
   0xc   : > { %s259_s19 = ssub.s32 %s2810_s13, %s3827_s16  ;;  %p274_p2 = scmp.eq.s32.totalorder %s2507_s18, 3 }
   0xd   : > { %p33_p3 = scmp.ge.s32.totalorder %s3829_s17, 2  ;;  %p2511_p4 = scmp.ge.s32.totalorder %s2818_s15, 1 }
   0xe   : > { %p2921_p5 = por %p274_p2, %p273_p1  ;;  %p360_p6 = scmp.lt.s32.totalorder %s2818_s15, 5 }
   0xf   : > { %s3831_s17 = smov (%p33_p3, %s3829_s17), 0  ;;  %s263_s23 = sadd.s32 1, %s2798_s10 }
  0x10   : > { %3788 = sst [smem:[#allocation8_spill]] %s3831_s17  ;;  %p361_p7 = pnand %p2511_p4, %p360_p6 }
  0x11   : > { %s258_s21 = ssub.s32 %s2814_s14, %s3831_s17 }
  0x12   : > { %s260_s22 = sor.u32 %s259_s19, %s258_s21  ;;  %364 = sbr.rel (%p361_p7) target bundleno = 1557 (0x615), region = 56 }
  0x13   : > { %p261_p8 = scmp.eq.s32.totalorder %s260_s22, 0 }
  0x15   : > { %s2932_s24 = scalar_select %p261_p8, %s2798_s10, %s263_s23  }
  0x17   : > { %3789 = sst [smem:[#allocation9_spill]] %s2932_s24 }
  0x19   : > { %p425_p9 = scmp.lt.s32.totalorder %s2806_s12, 1  ;;  %p442_p10 = scmp.lt.s32.totalorder %s2802_s11, 1  ;;  %v475_v0 = vlaneseq  ;;  %v2820_v1 = vmov 1966171168   ;;  %v773_v58 = vld [vmem:[%s3755_s6] sm:$0x1] }
  0x1a   : > { %v473_v2 = vunpack.c.l.s4 %v2820_v1  ;;  %v774_v1 = vunpack.c.l.bf16 %v773_v58  ;;  %vm811_vm0 = vcmask 261120   ;;  %vm967_vm1 = vcmask 130112   ;;  %s422_s15 = sand.u32 1, %s2794_s30   ;;  %s2547_s30 = sshll.u32 (%p2921_p5), %s2806_s12, 3 }
  0x1b   : > { %s2937_s25 = scalar_select %p425_p9, %s2806_s12, 1  ;;  %v2941_v4 = vshrl.u32 %v475_v0, 7  ;;  %vm1032_vm2 = vcmask 1041409   ;;  %vm1034_vm3 = vcmask 1042434   ;;  %vm1036_vm4 = vcmask 1043459  }
  0x1c   : > { %s443_s26 = scalar_select %p442_p10, %s2802_s11, 1  ;;  %v474_v3 = vunpack.c.0.s8 %v473_v2  ;;  %vm1038_vm5 = vcmask 1044484   ;;  %vm1040_vm6 = vcmask 1045509   ;;  %vm1042_vm7 = vcmask 1046534  }
  0x1d   : > { %s2944_s27 = sshll.u32 %s2937_s25, 3  ;;  %s2519_s28 = sshll.u32 %s2937_s25, 1  ;;  %v2963_v12 = vsub.s32 0, %v2941_v4  ;;  %vm1044_vm8 = vcmask 1047559   ;;  %vm1047_vm9 = vcmask 130048   ;;  %vm2823_vm10 = vmmov 0  }
  0x1e   : > { %s439_s19 = scalar_lea.vmem %s3751_s2, %s2944_s27  ;;  %s445_s21 = sadd.s32 %s2519_s28, %s443_s26  ;;  %v477_v5 = vsub.s32 %v474_v3, %v2941_v4 }
  0x1f   : > { %s2520_s22 = sshll.u32 %s445_s21, 3  ;;  %s434_s16 = scalar_lea.vmem %s3750_s1, %s2944_s27  ;;  %v2982_v33 = vld [vmem:[%s439_s19] sm:$0xff]  }
  0x20   : > { %s455_s24 = scalar_lea.vmem %s3753_s4, %s2520_s22  ;;  %s447_s9 = scalar_lea.vmem %s3752_s3, %s2520_s22  ;;  %v2989_v34 = vld [vmem:[%s434_s16] sm:$0xff]  }
  0x21   : > { %v469_v6 = vld [vmem:[%s455_s24] sm:$0xff]  ;;  %s429_s26 = scalar_lea.vmem %s3749_s0, %s2944_s27  ;;  %s2512_s16 = sshll.u32 %s422_s15, 5 }
  0x22   : > { %v467_v7 = vld [vmem:[%s447_s9] sm:$0xff]  ;;  %v470_v8 = vpack.c.bf16 %v469_v6, %v469_v6  ;;  %s2523_s9 = sshll.u32 %s2937_s25, 2  ;;  %s424_s17 = scalar_lea.vmem [#allocation2], %s2512_s16 }
  0x23   : > { %v468_v9 = vpack.c.bf16 %v467_v7, %v467_v7  ;;  %s459_s14 = scalar_lea.vmem %s3754_s5, %s2523_s9  ;;  %s2324_s25 = sadd.s32 (%p2921_p5), %s2802_s11, %s2547_s30 }
  0x24   : > { %v629_v10 = vrot.slane %v470_v8, %v477_v5  ;;  %s2548_s24 = sshll.u32 (%p2921_p5), %s2324_s25, 3  ;;  %s3818_s28 = sld [smem:[#allocation24_spill]] (%p2921_p5) }
  0x25   : > { %v478_v11 = vrot.slane %v468_v9, %v477_v5 }
  0x26   : > { %v637_v13 = vrot.slane %v629_v10, %v477_v5  ;;  %v630_v16 = vcombine.high %v629_v10, %v629_v10  ;;  %v3021_v10 = vrot.slane %v774_v1, %v2963_v12 }
  0x27   : > { %v486_v14 = vrot.slane %v478_v11, %v477_v5  ;;  %v479_v15 = vcombine.high %v478_v11, %v478_v11 }
  0x28   : > { %v2529_v17 = vpack.i.b16 %v637_v13, %v637_v13  ;;  %v648_v20 = vunpack.i.h.s16 %v637_v13  ;;  %v2967_v22 = vrot.slane %v630_v16, %v477_v5  ;;  %v2969_v24 = vcombine.high %v637_v13, %v637_v13 }
  0x29   : > { %v2524_v18 = vpack.i.b16 %v486_v14, %v486_v14  ;;  %v497_v19 = vunpack.i.h.s16 %v486_v14  ;;  %v2965_v21 = vrot.slane %v479_v15, %v477_v5  ;;  %v494_v23 = vcombine.high %v486_v14, %v486_v14 }
  0x2a   : > { %v666_v25 = vrot.slane %v2529_v17, %v2963_v12  ;;  %v656_v28 = vpack.i.b16 %v648_v20, %v648_v20  ;;  %v2530_v30 = vpack.i.b16 %v2967_v22, %v2967_v22  ;;  %v2531_v40 = vpack.i.b16 %v2969_v24, %v2969_v24  ;;  %s2326_s29 = scalar_lea.vmem (%p2921_p5), %s3818_s28, %s2548_s24 }
  0x2b   : > { %v515_v26 = vrot.slane %v2524_v18, %v2963_v12  ;;  %v505_v27 = vpack.i.b16 %v497_v19, %v497_v19  ;;  %v2525_v29 = vpack.i.b16 %v2965_v21, %v2965_v21  ;;  %v2526_v31 = vpack.i.b16 %v494_v23, %v494_v23 }
  0x2c   : > { %v696_v32 = vpack.i.b16 %v666_v25, %v666_v25  ;;  %v670_v37 = vrot.slane %v656_v28, %v2963_v12  ;;  %v674_v39 = vrot.slane %v2530_v30, %v2963_v12  ;;  %v682_v53 = vrot.slane %v2531_v40, %v2963_v12 }
  0x2d   : > { %v545_v35 = vpack.i.b16 %v515_v26, %v515_v26  ;;  %v519_v36 = vrot.slane %v505_v27, %v2963_v12  ;;  %v523_v38 = vrot.slane %v2525_v29, %v2963_v12  ;;  %v531_v46 = vrot.slane %v2526_v31, %v2963_v12 }
  0x2e   : > { %v701_v41 = vrot.slane %v696_v32, %v2963_v12  ;;  %v703_v44 = vpack.i.b16 %v670_v37, %v670_v37  ;;  %v710_v52 = vpack.i.b16 %v674_v39, %v674_v39  ;;  %v499_v56 = vunpack.i.h.s16 %v2965_v21 }
  0x2f   : > { %v550_v42 = vrot.slane %v545_v35, %v2963_v12  ;;  %v552_v43 = vpack.i.b16 %v519_v36, %v519_v36  ;;  %v559_v45 = vpack.i.b16 %v523_v38, %v523_v38  ;;  %v573_v57 = vpack.i.b16 %v531_v46, %v531_v46 }
  0x30   : > { %v757_v47 = vadd.bf16 %v2982_v33, %v701_v41  ;;  %v708_v50 = vrot.slane %v703_v44, %v2963_v12  ;;  %v715_v59 = vrot.slane %v710_v52, %v2963_v12  ;;  %v724_v60 = vpack.i.b16 %v682_v53, %v682_v53 }
  0x31   : > { %v606_v48 = vadd.bf16 %v2989_v34, %v550_v42  ;;  %v557_v49 = vrot.slane %v552_v43, %v2963_v12  ;;  %v564_v51 = vrot.slane %v559_v45, %v2963_v12  ;;  %v507_v62 = vpack.i.b16 %v499_v56, %v499_v56 }
  0x32   : > { %2664 = vtanh.bf16 %v757_v47  ;;  %v758_v55 = vadd.bf16 %v2982_v33, %v708_v50  ;;  %v650_v63 = vunpack.i.h.s16 %v2967_v22  ;;  %v578_v2 = vrot.slane %v573_v57, %v2963_v12 }
  0x33   : > { %v607_v54 = vadd.bf16 %v2989_v34, %v557_v49  ;;  %2666 = vtanh.bf16 %v606_v48  ;;  %v608_v61 = vadd.bf16 %v2989_v34, %v564_v51  ;;  %v729_v3 = vrot.slane %v724_v60, %v2963_v12 }
  0x34   : > { %v501_v5 = vunpack.i.h.s16 %v494_v23  ;;  %v759_v6 = vadd.bf16 %v2982_v33, %v715_v59  ;;  %v527_v7 = vrot.slane %v507_v62, %v2963_v12  ;;  %v658_v8 = vpack.i.b16 %v650_v63, %v650_v63 }
  0x35   : > { %2668 = vtanh.bf16 %v607_v54  ;;  %v652_v9 = vunpack.i.h.s16 %v2969_v24  ;;  %v610_v11 = vadd.bf16 %v2989_v34, %v578_v2  ;;  %v761_v14 = vadd.bf16 %v2982_v33, %v729_v3 }
  0x36   : > { %2670 = vtanh.bf16 %v758_v55  ;;  %v509_v15 = vpack.i.b16 %v501_v5, %v501_v5  ;;  %v566_v18 = vpack.i.b16 %v527_v7, %v527_v7  ;;  %v678_v19 = vrot.slane %v658_v8, %v2963_v12 }
  0x37   : > { %2672 = vtanh.bf16 %v608_v61  ;;  %v660_v24 = vpack.i.b16 %v652_v9, %v652_v9  ;;  %v3028_v26 = vcombine.high %v2965_v21, %v2965_v21  ;;  %v646_v41 = vcombine.high %v2967_v22, %v2967_v22 }
  0x38   : > { %2674 = vtanh.bf16 %v759_v6  ;;  %v535_v36 = vrot.slane %v509_v15, %v2963_v12  ;;  %v571_v21 = vrot.slane %v566_v18, %v2963_v12  ;;  %v717_v39 = vpack.i.b16 %v678_v19, %v678_v19 }
  0x39   : > { %2676 = vtanh.bf16 %v610_v11  ;;  %v2527_v45 = vpack.i.b16 %v3028_v26, %v3028_v26  ;;  %v686_v52 = vrot.slane %v660_v24, %v2963_v12  ;;  %v2532_v53 = vpack.i.b16 %v646_v41, %v646_v41 }
  0x3a   : > { %2678 = vtanh.bf16 %v761_v14  ;;  %v609_v50 = vadd.bf16 %v2989_v34, %v571_v21  ;;  %v722_v22 = vrot.slane %v717_v39, %v2963_v12  ;;  %v580_v51 = vpack.i.b16 %v535_v36, %v535_v36 }
  0x3b   : > { %v539_v57 = vrot.slane %v2527_v45, %v2963_v12  ;;  %v503_v62 = vunpack.i.h.s16 %v3028_v26  ;;  %v731_v2 = vpack.i.b16 %v686_v52, %v686_v52  ;;  %v690_v5 = vrot.slane %v2532_v53, %v2963_v12 }
  0x3c   : > { %2680 = vtanh.bf16 %v609_v50  ;;  %v760_v63 = vadd.bf16 %v2982_v33, %v722_v22  ;;  %v585_v1 = vrot.slane %v580_v51, %v2963_v12  ;;  %v654_v15 = vunpack.i.h.s16 %v646_v41 }
  0x3d   : > { %v2665_v13 = vpop.eup %2664  ;;  %v587_v9 = vpack.i.b16 %v539_v57, %v539_v57  ;;  %v511_v18 = vpack.i.b16 %v503_v62, %v503_v62  ;;  %v738_v24 = vpack.i.b16 %v690_v5, %v690_v5 }
  0x3e   : > { %v2667_v16 = vpop.eup %2666  ;;  %v861_v17 = vunpack.c.h.bf16 %v2665_v13  ;;  %v860_v35 = vunpack.c.l.bf16 %v2665_v13  ;;  %2682 = vtanh.bf16 %v760_v63 }
  0x3f   : > { %v775_v23 = vunpack.c.l.bf16 %v2667_v16  ;;  %v776_v25 = vunpack.c.h.bf16 %v2667_v16  ;;  %v611_v16 = vadd.bf16 %v2989_v34, %v585_v1 }
  0x40   : > { %v2669_v20 = vpop.eup %2668  ;;  %v877_v27 = vmul.f32 %v861_v17, %v3021_v10  ;;  %v876_v48 = vmul.f32 %v860_v35, %v3021_v10  ;;  %v736_v17 = vrot.slane %v731_v2, %v2963_v12 }
  0x41   : > { %v777_v28 = vunpack.c.l.bf16 %v2669_v20  ;;  %v778_v29 = vunpack.c.h.bf16 %v2669_v20  ;;  %v2671_v30 = vpop.eup %2670  ;;  %v795_v31 = vmul.f32 %v3021_v10, %v775_v23  ;;  %v796_v32 = vmul.f32 %v3021_v10, %v776_v25 }
  0x42   : > { %v895_v37 = vsel %vm811_vm0, %v877_v27, 0.0  ;;  %v863_v44 = vunpack.c.h.bf16 %v2671_v30  ;;  %v2673_v46 = vpop.eup %2672  ;;  %v862_v49 = vunpack.c.l.bf16 %v2671_v30  ;;  %v892_v59 = vsel %vm811_vm0, %v876_v48, 0.0 }
  0x43   : > { %v797_v38 = vmul.f32 %v3021_v10, %v777_v28  ;;  %896 = vadd.xlane.f32.xlu1 %v895_v37  ;;  %v812_v40 = vsel %vm811_vm0, %v795_v31, 0.0  ;;  %v798_v43 = vmul.f32 %v3021_v10, %v778_v29  ;;  %v815_v47 = vsel %vm811_vm0, %v796_v32, 0.0  ;;  %v2675_v58 = vpop.eup %2674 }
  0x44   : > { %813 = vadd.xlane.f32.xlu0 %v812_v40  ;;  %v879_v55 = vmul.f32 %v863_v44, %v3021_v10  ;;  %v780_v56 = vunpack.c.h.bf16 %v2673_v46  ;;  %v878_v60 = vmul.f32 %v862_v49, %v3021_v10  ;;  %v779_v61 = vunpack.c.l.bf16 %v2673_v46  ;;  %v2677_v3 = vpop.eup %2676 }
  0x45   : > { %v818_v42 = vsel %vm811_vm0, %v797_v38, 0.0  ;;  %v821_v54 = vsel %vm811_vm0, %v798_v43, 0.0  ;;  %v865_v8 = vunpack.c.h.bf16 %v2675_v58  ;;  %v864_v14 = vunpack.c.l.bf16 %v2675_v58  ;;  %v2679_v19 = vpop.eup %2678 }
  0x46   : > { %v901_v6 = vsel %vm811_vm0, %v879_v55, 0.0  ;;  %v800_v7 = vmul.f32 %v3021_v10, %v780_v56  ;;  %v898_v11 = vsel %vm811_vm0, %v878_v60, 0.0  ;;  %v799_v13 = vmul.f32 %v3021_v10, %v779_v61 }
  0x47   : > { %819 = vadd.xlane.f32.xlu1 %v818_v42  ;;  %v881_v23 = vmul.f32 %v865_v8, %v3021_v10  ;;  %v784_v25 = vunpack.c.h.bf16 %v2677_v3  ;;  %v880_v27 = vmul.f32 %v864_v14, %v3021_v10  ;;  %v783_v28 = vunpack.c.l.bf16 %v2677_v3  ;;  %v2681_v38 = vpop.eup %2680 }
  0x48   : > { %816 = vadd.xlane.f32.xlu0 %v815_v47  ;;  %v827_v20 = vsel %vm811_vm0, %v800_v7, 0.0  ;;  %v824_v26 = vsel %vm811_vm0, %v799_v13, 0.0  ;;  %v592_v29 = vrot.slane %v587_v9, %v2963_v12  ;;  %2684 = vtanh.bf16 %v611_v16 }
  0x49   : > { %v762_v30 = vadd.bf16 %v2982_v33, %v736_v17  ;;  %v543_v31 = vrot.slane %v511_v18, %v2963_v12  ;;  %v662_v32 = vpack.i.b16 %v654_v15, %v654_v15  ;;  %v907_v35 = vsel %vm811_vm0, %v881_v23, 0.0  ;;  %v2683_v48 = vpop.eup %2682 }
  0x4a   : > { %v804_v36 = vmul.f32 %v3021_v10, %v784_v25  ;;  %v869_v37 = vunpack.c.h.bf16 %v2679_v19  ;;  %v904_v21 = vsel %vm811_vm0, %v880_v27, 0.0  ;;  %v803_v39 = vmul.f32 %v3021_v10, %v783_v28 }
  0x4b   : > { %822 = vadd.xlane.f32.xlu1 %v821_v54  ;;  %v868_v40 = vunpack.c.l.bf16 %v2679_v19  ;;  %v612_v41 = vadd.bf16 %v2989_v34, %v592_v29  ;;  %2686 = vtanh.bf16 %v762_v30  ;;  %v743_v42 = vrot.slane %v738_v24, %v2963_v12 }
  0x4c   : > { %893 = vadd.xlane.f32.xlu0 %v892_v59  ;;  %v594_v43 = vpack.i.b16 %v543_v31, %v543_v31  ;;  %v694_v44 = vrot.slane %v662_v32, %v2963_v12  ;;  %v839_v45 = vsel %vm811_vm0, %v804_v36, 0.0  ;;  %v885_v46 = vmul.f32 %v869_v37, %v3021_v10 }
  0x4d   : > { %v782_v47 = vunpack.c.h.bf16 %v2681_v38  ;;  %v836_v49 = vsel %vm811_vm0, %v803_v39, 0.0  ;;  %v884_v50 = vmul.f32 %v868_v40, %v3021_v10  ;;  %v781_v22 = vunpack.c.l.bf16 %v2681_v38 }
  0x4e   : > { %2688 = vtanh.bf16 %v612_v41  ;;  %v763_v51 = vadd.bf16 %v2982_v33, %v743_v42  ;;  %v599_v52 = vrot.slane %v594_v43, %v2963_v12  ;;  %v745_v53 = vpack.i.b16 %v694_v44, %v694_v44 }
  0x4f   : > { %902 = vadd.xlane.f32.xlu1 %v901_v6  ;;  %v919_v54 = vsel %vm811_vm0, %v885_v46, 0.0  ;;  %v802_v55 = vmul.f32 %v3021_v10, %v782_v47  ;;  %v867_v56 = vunpack.c.h.bf16 %v2683_v48  ;;  %v916_v58 = vsel %vm811_vm0, %v884_v50, 0.0 }
  0x50   : > { %899 = vadd.xlane.f32.xlu0 %v898_v11  ;;  %v801_v59 = vmul.f32 %v3021_v10, %v781_v22  ;;  %v866_v60 = vunpack.c.l.bf16 %v2683_v48  ;;  %2690 = vtanh.bf16 %v763_v51  ;;  %v613_v61 = vadd.bf16 %v2989_v34, %v599_v52 }
  0x51   : > { %v750_v62 = vrot.slane %v745_v53, %v2963_v12  ;;  %v833_v63 = vsel %vm811_vm0, %v802_v55, 0.0  ;;  %v883_v1 = vmul.f32 %v867_v56, %v3021_v10 }
  0x52   : > { %v830_v5 = vsel %vm811_vm0, %v801_v59, 0.0  ;;  %v882_v6 = vmul.f32 %v866_v60, %v3021_v10  ;;  %2692 = vtanh.bf16 %v613_v61 }
  0x53   : > { %828 = vadd.xlane.f32.xlu1 %v827_v20  ;;  %v2685_v57 = vpop.eup %2684  ;;  %v764_v8 = vadd.bf16 %v2982_v33, %v750_v62  ;;  %v913_v34 = vsel %vm811_vm0, %v883_v1, 0.0 }
  0x54   : > { %825 = vadd.xlane.f32.xlu0 %v824_v26  ;;  %v786_v2 = vunpack.c.h.bf16 %v2685_v57  ;;  %v785_v7 = vunpack.c.l.bf16 %v2685_v57  ;;  %v910_v14 = vsel %vm811_vm0, %v882_v6, 0.0  ;;  %v957_v6 = vand.u32 127, %v475_v0 }
  0x55   : > { %2694 = vtanh.bf16 %v764_v8 }
  0x56   : > { %v2687_v3 = vpop.eup %2686  ;;  %v806_v9 = vmul.f32 %v3021_v10, %v786_v2  ;;  %v805_v15 = vmul.f32 %v3021_v10, %v785_v7 }
  0x57   : > { %908 = vadd.xlane.f32.xlu1 %v907_v35  ;;  %v871_v11 = vunpack.c.h.bf16 %v2687_v3  ;;  %v870_v16 = vunpack.c.l.bf16 %v2687_v3 }
  0x58   : > { %905 = vadd.xlane.f32.xlu0 %v904_v21  ;;  %v845_v17 = vsel %vm811_vm0, %v806_v9, 0.0  ;;  %v842_v20 = vsel %vm811_vm0, %v805_v15, 0.0 }
  0x59   : > { %v2689_v13 = vpop.eup %2688  ;;  %v887_v33 = vmul.f32 %v871_v11, %v3021_v10  ;;  %v886_v23 = vmul.f32 %v870_v16, %v3021_v10 }
  0x5a   : > { %v788_v18 = vunpack.c.h.bf16 %v2689_v13  ;;  %v787_v25 = vunpack.c.l.bf16 %v2689_v13  ;;  %v3167_v13 = vsub.s32 %v957_v6, %v2941_v4 }
  0x5b   : > { %840 = vadd.xlane.f32.xlu1 %v839_v45  ;;  %v2691_v19 = vpop.eup %2690  ;;  %v925_v24 = vsel %vm811_vm0, %v887_v33, 0.0  ;;  %v922_v29 = vsel %vm811_vm0, %v886_v23, 0.0 }
  0x5c   : > { %837 = vadd.xlane.f32.xlu0 %v836_v49  ;;  %v808_v26 = vmul.f32 %v3021_v10, %v788_v18  ;;  %v873_v27 = vunpack.c.h.bf16 %v2691_v19  ;;  %v807_v30 = vmul.f32 %v3021_v10, %v787_v25  ;;  %v872_v31 = vunpack.c.l.bf16 %v2691_v19 }
  0x5d   : > { %v2693_v28 = vpop.eup %2692 }
  0x5e   : > { %v851_v32 = vsel %vm811_vm0, %v808_v26, 0.0  ;;  %v889_v35 = vmul.f32 %v873_v27, %v3021_v10  ;;  %v790_v36 = vunpack.c.h.bf16 %v2693_v28  ;;  %v848_v38 = vsel %vm811_vm0, %v807_v30, 0.0 }
  0x5f   : > { %920 = vadd.xlane.f32.xlu1 %v919_v54  ;;  %v888_v21 = vmul.f32 %v872_v31, %v3021_v10  ;;  %v789_v39 = vunpack.c.l.bf16 %v2693_v28 }
  0x60   : > { %917 = vadd.xlane.f32.xlu0 %v916_v58  ;;  %v2695_v37 = vpop.eup %2694  ;;  %v931_v40 = vsel %vm811_vm0, %v889_v35, 0.0  ;;  %v810_v41 = vmul.f32 %v3021_v10, %v790_v36 }
  0x61   : > { %v875_v42 = vunpack.c.h.bf16 %v2695_v37  ;;  %v928_v43 = vsel %vm811_vm0, %v888_v21, 0.0  ;;  %v809_v44 = vmul.f32 %v3021_v10, %v789_v39  ;;  %v874_v45 = vunpack.c.l.bf16 %v2695_v37 }
  0x62   : > { %v857_v46 = vsel %vm811_vm0, %v810_v41, 0.0 }
  0x63   : > { %834 = vadd.xlane.f32.xlu1 %v833_v63  ;;  %v891_v47 = vmul.f32 %v875_v42, %v3021_v10  ;;  %v854_v48 = vsel %vm811_vm0, %v809_v44, 0.0  ;;  %v890_v49 = vmul.f32 %v874_v45, %v3021_v10 }
  0x64   : > { %831 = vadd.xlane.f32.xlu0 %v830_v5 }
  0x65   : > { %v937_v50 = vsel %vm811_vm0, %v891_v47, 0.0  ;;  %v934_v22 = vsel %vm811_vm0, %v890_v49, 0.0 }
  0x67   : > { %914 = vadd.xlane.f32.xlu1 %v913_v34  ;;  %v962_v34 = vadd.s32 4294967288, %v957_v6 }
  0x68   : > { %911 = vadd.xlane.f32.xlu0 %v910_v14 }
  0x69   : > { %v3170_v14 = vsub.s32 %v962_v34, %v2941_v4 }
  0x6b   : > { %846 = vadd.xlane.f32.xlu1 %v845_v17 }
  0x6c   : > { %843 = vadd.xlane.f32.xlu0 %v842_v20 }
  0x6f   : > { %926 = vadd.xlane.f32.xlu1 %v925_v24 }
  0x70   : > { %923 = vadd.xlane.f32.xlu0 %v922_v29 }
  0x73   : > { %852 = vadd.xlane.f32.xlu1 %v851_v32 }
  0x74   : > { %849 = vadd.xlane.f32.xlu0 %v848_v38 }
  0x77   : > { %932 = vadd.xlane.f32.xlu1 %v931_v40 }
  0x78   : > { %929 = vadd.xlane.f32.xlu0 %v928_v43 }
  0x7b   : > { %858 = vadd.xlane.f32.xlu1 %v857_v46 }
  0x7c   : > { %855 = vadd.xlane.f32.xlu0 %v854_v48 }
  0x7f   : > { %938 = vadd.xlane.f32.xlu1 %v937_v50 }
  0x80   : > { %935 = vadd.xlane.f32.xlu0 %v934_v22 }
  0xd0   : > { %v3121_v51 = vpop.xlane.xlu1 %896 }
  0xd1   : > { %v3123_v52 = vpop.xlane.xlu0 %813  ;;  %v1376_v28 = vrot.slane %v3121_v51, %v3170_v14 }
  0xd2   : > { %v961_v17 = vrot.slane %v3123_v52, %v3167_v13 }
  0xd4   : > { %v3125_v53 = vpop.xlane.xlu1 %819 }
  0xd5   : > { %v3127_v54 = vpop.xlane.xlu0 %816  ;;  %v972_v26 = vrot.slane %v3125_v53, %v3167_v13 }
  0xd6   : > { %v966_v0 = vrot.slane %v3127_v54, %v3170_v14 }
  0xd8   : > { %v3129_v55 = vpop.xlane.xlu1 %822  ;;  %v968_v29 = vsel %vm967_vm1, %v966_v0, %v961_v17 }
  0xd9   : > { %v3131_v56 = vpop.xlane.xlu0 %893  ;;  %v976_v33 = vrot.slane %v3129_v55, %v3170_v14 }
  0xda   : > { %v1372_v30 = vrot.slane %v3131_v56, %v3167_v13 }
  0xdb   : > { %v977_v32 = vsel %vm967_vm1, %v976_v33, %v972_v26 }
  0xdc   : > { %v3133_v10 = vpop.xlane.xlu1 %902  ;;  %v1033_v46 = vsel %vm1032_vm2, %v977_v32, %v968_v29  ;;  %v1377_v47 = vsel %vm967_vm1, %v1376_v28, %v1372_v30 }
  0xdd   : > { %v3135_v57 = vpop.xlane.xlu0 %899  ;;  %v1385_v18 = vrot.slane %v3133_v10, %v3170_v14 }
  0xde   : > { %v1381_v19 = vrot.slane %v3135_v57, %v3167_v13 }
  0xe0   : > { %v3137_v58 = vpop.xlane.xlu1 %828  ;;  %v1386_v35 = vsel %vm967_vm1, %v1385_v18, %v1381_v19 }
  0xe1   : > { %v3139_v59 = vpop.xlane.xlu0 %825  ;;  %v985_v20 = vrot.slane %v3137_v58, %v3170_v14  ;;  %v1441_v22 = vsel %vm1032_vm2, %v1386_v35, %v1377_v47 }
  0xe2   : > { %v981_v23 = vrot.slane %v3139_v59, %v3167_v13 }
  0xe4   : > { %v3141_v60 = vpop.xlane.xlu1 %908  ;;  %v986_v38 = vsel %vm967_vm1, %v985_v20, %v981_v23 }
  0xe5   : > { %v3143_v61 = vpop.xlane.xlu0 %905  ;;  %v1394_v36 = vrot.slane %v3141_v60, %v3170_v14  ;;  %v1035_v6 = vsel %vm1034_vm3, %v986_v38, %v1033_v46 }
  0xe6   : > { %v1390_v37 = vrot.slane %v3143_v61, %v3167_v13 }
  0xe8   : > { %v3145_v62 = vpop.xlane.xlu1 %840  ;;  %v1395_v34 = vsel %vm967_vm1, %v1394_v36, %v1390_v37 }
  0xe9   : > { %v3147_v63 = vpop.xlane.xlu0 %837  ;;  %v1003_v21 = vrot.slane %v3145_v62, %v3170_v14  ;;  %v1442_v35 = vsel %vm1034_vm3, %v1395_v34, %v1441_v22 }
  0xea   : > { %v999_v39 = vrot.slane %v3147_v63, %v3167_v13 }
  0xec   : > { %v3149_v1 = vpop.xlane.xlu1 %920  ;;  %v1004_v0 = vsel %vm967_vm1, %v1003_v21, %v999_v39 }
  0xed   : > { %v3151_v2 = vpop.xlane.xlu0 %917  ;;  %v1412_v17 = vrot.slane %v3149_v1, %v3170_v14 }
  0xee   : > { %v1408_v33 = vrot.slane %v3151_v2, %v3167_v13 }
  0xf0   : > { %v3153_v3 = vpop.xlane.xlu1 %834 }
  0xf1   : > { %v3155_v5 = vpop.xlane.xlu0 %831  ;;  %v994_v25 = vrot.slane %v3153_v3, %v3170_v14 }
  0xf2   : > { %v990_v24 = vrot.slane %v3155_v5, %v3167_v13 }
  0xf4   : > { %v3158_v7 = vpop.xlane.xlu1 %914  ;;  %v995_v40 = vsel %vm967_vm1, %v994_v25, %v990_v24 }
  0xf5   : > { %v3160_v8 = vpop.xlane.xlu0 %911  ;;  %v1403_v41 = vrot.slane %v3158_v7, %v3170_v14  ;;  %v1037_v18 = vsel %vm1036_vm4, %v995_v40, %v1035_v6 }
  0xf6   : > { %v1399_v42 = vrot.slane %v3160_v8, %v3167_v13  ;;  %v1039_v37 = vsel %vm1038_vm5, %v1004_v0, %v1037_v18 }
  0xf8   : > { %v3162_v9 = vpop.xlane.xlu1 %846  ;;  %v1404_v19 = vsel %vm967_vm1, %v1403_v41, %v1399_v42 }
  0xf9   : > { %v3164_v11 = vpop.xlane.xlu0 %843  ;;  %v1012_v43 = vrot.slane %v3162_v9, %v3170_v14  ;;  %v1443_v38 = vsel %vm1036_vm4, %v1404_v19, %v1442_v35  ;;  %v2821_v19 = vmov 0  }
  0xfa   : > { %v1008_v44 = vrot.slane %v3164_v11, %v3167_v13  ;;  %2654 = vset.pattern.permute.xlu1 %v2821_v19  ;;  %2653 = vset.pattern.permute.xlu0 %v2821_v19 }
  0xfc   : > { %v3172_v15 = vpop.xlane.xlu1 %926  ;;  %v1013_v20 = vsel %vm967_vm1, %v1012_v43, %v1008_v44  ;;  %v1413_v43 = vsel %vm967_vm1, %v1412_v17, %v1408_v33 }
  0xfd   : > { %v3176_v16 = vpop.xlane.xlu0 %923  ;;  %v1421_v23 = vrot.slane %v3172_v15, %v3170_v14  ;;  %v1041_v21 = vsel %vm1040_vm6, %v1013_v20, %v1039_v37  ;;  %v1444_v6 = vsel %vm1038_vm5, %v1413_v43, %v1443_v38  ;;  %v3289_v20 = vsub.s32 1, %v2941_v4 }
  0xfe   : > { %v1417_v25 = vrot.slane %v3176_v16, %v3167_v13 }
 0x100   : > { %v3196_v27 = vpop.xlane.xlu1 %852  ;;  %v1422_v39 = vsel %vm967_vm1, %v1421_v23, %v1417_v25  ;;  %v3292_v23 = vsub.s32 2, %v2941_v4 }
 0x101   : > { %v3203_v31 = vpop.xlane.xlu0 %849  ;;  %v1021_v48 = vrot.slane %v3196_v27, %v3170_v14  ;;  %v1445_v34 = vsel %vm1040_vm6, %v1422_v39, %v1444_v6 }
 0x102   : > { %v1017_v49 = vrot.slane %v3203_v31, %v3167_v13 }
 0x104   : > { %v3225_v45 = vpop.xlane.xlu1 %932  ;;  %v1022_v32 = vsel %vm967_vm1, %v1021_v48, %v1017_v49 }
 0x105   : > { %v3233_v50 = vpop.xlane.xlu0 %929  ;;  %v1430_v26 = vrot.slane %v3225_v45, %v3170_v14  ;;  %v1043_v42 = vsel %vm1042_vm7, %v1022_v32, %v1041_v21 }
 0x106   : > { %v1426_v28 = vrot.slane %v3233_v50, %v3167_v13 }
 0x108   : > { %v3250_v24 = vpop.xlane.xlu1 %858  ;;  %v1431_v48 = vsel %vm967_vm1, %v1430_v26, %v1426_v28 }
 0x109   : > { %v1030_v29 = vrot.slane %v3250_v24, %v3170_v14  ;;  %v3258_v30 = vpop.xlane.xlu0 %855  ;;  %v1446_v17 = vsel %vm1042_vm7, %v1431_v48, %v1445_v34 }
 0x10a   : > { %v1026_v36 = vrot.slane %v3258_v30, %v3167_v13 }
 0x10c   : > { %v3268_v40 = vpop.xlane.xlu1 %938  ;;  %v1031_v41 = vsel %vm967_vm1, %v1030_v29, %v1026_v36 }
 0x10d   : > { %v1439_v44 = vrot.slane %v3268_v40, %v3170_v14  ;;  %v3275_v46 = vpop.xlane.xlu0 %935  ;;  %v1045_v47 = vsel %vm1044_vm8, %v1031_v41, %v1043_v42 }
 0x10e   : > { %v1435_v49 = vrot.slane %v3275_v46, %v3167_v13  ;;  %v1048_v22 = vsel %vm1047_vm9, %v1045_v47, -inf }
 0x10f   : > { %1049 = vmax.xlane.f32.xlu0 %v1048_v22 }
 0x110   : > { %v1440_v0 = vsel %vm967_vm1, %v1439_v44, %v1435_v49 }
 0x111   : > { %v1447_v33 = vsel %vm1044_vm8, %v1440_v0, %v1446_v17 }
 0x112   : > { %v1449_v18 = vsel %vm1047_vm9, %v1447_v33, -inf }
 0x113   : > { %1450 = vmax.xlane.f32.xlu1 %v1449_v18 }
 0x19c   : > { %v3294_v25 = vpop.xlane.xlu0 %1049 }
 0x19d   : > { %v1055_v26 = vrot.slane %v3294_v25, %v2963_v12  ;;  %v1059_v28 = vrot.slane %v3294_v25, %v3289_v20  ;;  %v1063_v29 = vrot.slane %v3294_v25, %v3292_v23 }
 0x19f   : > { %v1092_v32 = vsub.f32 %v3123_v52, %v1055_v26  ;;  %v1093_v35 = vsub.f32 %v3127_v54, %v1055_v26  ;;  %v1094_v36 = vsub.f32 %v3125_v53, %v1059_v28  ;;  %v1097_v37 = vsub.f32 %v3137_v58, %v1063_v29 }
 0x1a0   : > { %v1095_v41 = vsub.f32 %v3129_v55, %v1059_v28  ;;  %v3307_v43 = vpop.xlane.xlu1 %1450  ;;  %v3313_v54 = vsub.s32 3, %v2941_v4 }
 0x1a1   : > { %v1108_v38 = vmul.f32 1.442695, %v1092_v32  ;;  %v1110_v21 = vmul.f32 1.442695, %v1093_v35  ;;  %v1112_v39 = vmul.f32 1.442695, %v1094_v36  ;;  %v1456_v52 = vrot.slane %v3307_v43, %v2963_v12 }
 0x1a2   : > { %v1118_v42 = vmul.f32 1.442695, %v1097_v37  ;;  %v1114_v44 = vmul.f32 1.442695, %v1095_v41  ;;  %v1464_v58 = vrot.slane %v3307_v43, %v3292_v23  ;;  %v1460_v48 = vrot.slane %v3307_v43, %v3289_v20 }
 0x1a3   : > { %2696 = vpow2.f32 %v1108_v38  ;;  %v1493_v53 = vsub.f32 %v3131_v56, %v1456_v52  ;;  %v1494_v49 = vsub.f32 %v3121_v51, %v1456_v52  ;;  %v1067_v56 = vrot.slane %v3294_v25, %v3313_v54 }
 0x1a4   : > { %2698 = vpow2.f32 %v1110_v21  ;;  %v1498_v6 = vsub.f32 %v3141_v60, %v1464_v58  ;;  %v1495_v17 = vsub.f32 %v3135_v57, %v1460_v48  ;;  %v3337_v51 = vsub.s32 4, %v2941_v4 }
 0x1a5   : > { %2700 = vpow2.f32 %v1112_v39  ;;  %v1509_v22 = vmul.f32 1.442695, %v1493_v53  ;;  %v1511_v33 = vmul.f32 1.442695, %v1494_v49  ;;  %v1099_v18 = vsub.f32 %v3153_v3, %v1067_v56 }
 0x1a6   : > { %2702 = vpow2.f32 %v1118_v42  ;;  %v1468_v60 = vrot.slane %v3307_v43, %v3313_v54  ;;  %v1519_v19 = vmul.f32 1.442695, %v1498_v6  ;;  %v1496_v28 = vsub.f32 %v3133_v10, %v1460_v48 }
 0x1a7   : > { %2704 = vpow2.f32 %v1114_v44  ;;  %v1513_v57 = vmul.f32 1.442695, %v1495_v17  ;;  %v1071_v32 = vrot.slane %v3294_v25, %v3337_v51  ;;  %v1122_v35 = vmul.f32 1.442695, %v1099_v18 }
 0x1a8   : > { %2706 = vpow2.f32 %v1509_v22  ;;  %v1500_v36 = vsub.f32 %v3158_v7, %v1468_v60  ;;  %v3350_v3 = vsub.s32 5, %v2941_v4  ;;  %v1096_v37 = vsub.f32 %v3139_v59, %v1063_v29 }
 0x1a9   : > { %2708 = vpow2.f32 %v1511_v33  ;;  %v1515_v38 = vmul.f32 1.442695, %v1496_v28  ;;  %v1101_v10 = vsub.f32 %v3145_v62, %v1071_v32  ;;  %v1472_v21 = vrot.slane %v3307_v43, %v3337_v51 }
 0x1aa   : > { %2710 = vpow2.f32 %v1519_v19  ;;  %v1523_v39 = vmul.f32 1.442695, %v1500_v36  ;;  %v1116_v7 = vmul.f32 1.442695, %v1096_v37  ;;  %v1497_v42 = vsub.f32 %v3143_v61, %v1464_v58 }
 0x1ab   : > { %2712 = vpow2.f32 %v1513_v57  ;;  %v3362_v59 = vrot.slane %v3294_v25, %v3350_v3  ;;  %v1126_v29 = vmul.f32 1.442695, %v1101_v10  ;;  %v1502_v62 = vsub.f32 %v3149_v1, %v1472_v21 }
 0x1ac   : > { %2714 = vpow2.f32 %v1122_v35  ;;  %v3371_v53 = vsub.s32 6, %v2941_v4  ;;  %v1098_v61 = vsub.f32 %v3155_v5, %v1067_v56  ;;  %v1517_v58 = vmul.f32 1.442695, %v1497_v42 }
 0x1ad   : > { %v3317_v55 = vpop.eup %2696  ;;  %2716 = vpow2.f32 %v1515_v38  ;;  %v1103_v48 = vsub.f32 %v3162_v9, %v3362_v59  ;;  %v1476_v1 = vrot.slane %v3307_v43, %v3350_v3  ;;  %v1527_v49 = vmul.f32 1.442695, %v1502_v62 }
 0x1ae   : > { %v3319_v47 = vpop.eup %2698  ;;  %1157 = vperm.xlu0 %2653, %v3317_v55   ;;  %2718 = vpow2.f32 %v1523_v39  ;;  %3790 = vst [vmem:[#allocation10_spill] sm:$0xff] %v3371_v53  ;;  %v1120_v17 = vmul.f32 1.442695, %v1098_v61  ;;  %v1499_v5 = vsub.f32 %v3160_v8, %v1468_v60  ;;  %v1079_v9 = vrot.slane %v3294_v25, %v3371_v53 }
 0x1af   : > { %1160 = vperm.xlu1 %2654, %v3319_v47   ;;  %v3329_v34 = vpop.eup %2700  ;;  %2720 = vpow2.f32 %v1116_v7  ;;  %v1130_v56 = vmul.f32 1.442695, %v1103_v48  ;;  %v1504_v33 = vsub.f32 %v3172_v15, %v1476_v1  ;;  %v3395_v28 = vsub.s32 7, %v2941_v4 }
 0x1b0   : > { %v3331_v0 = vpop.eup %2702  ;;  %2722 = vpow2.f32 %v1126_v29  ;;  %v1100_v8 = vsub.f32 %v3147_v63, %v1071_v32  ;;  %v1521_v60 = vmul.f32 1.442695, %v1499_v5  ;;  %v1105_v57 = vsub.f32 %v3196_v27, %v1079_v9 }
 0x1b1   : > { %v3342_v26 = vpop.eup %2704  ;;  %2724 = vpow2.f32 %v1517_v58  ;;  %3791 = vst [vmem:[#allocation11_spill] sm:$0xff] %v3395_v28  ;;  %v1480_v15 = vrot.slane %v3307_v43, %v3371_v53  ;;  %v1531_v35 = vmul.f32 1.442695, %v1504_v33  ;;  %v1501_v63 = vsub.f32 %v3151_v2, %v1472_v21 }
 0x1b2   : > { %1172 = vperm.xlu0 %2653, %v3331_v0   ;;  %v3356_v41 = vpop.eup %2706  ;;  %2726 = vpow2.f32 %v1527_v49  ;;  %v1124_v4 = vmul.f32 1.442695, %v1100_v8  ;;  %v1083_v27 = vrot.slane %v3294_v25, %v3395_v28  ;;  %v1134_v32 = vmul.f32 1.442695, %v1105_v57 }
 0x1b3   : > { %1163 = vperm.xlu1 %2654, %v3329_v34   ;;  %v3365_v52 = vpop.eup %2708  ;;  %2728 = vpow2.f32 %v1120_v17  ;;  %v1506_v38 = vsub.f32 %v3225_v45, %v1480_v15  ;;  %v1102_v7 = vsub.f32 %v3164_v11, %v3362_v59  ;;  %v1525_v2 = vmul.f32 1.442695, %v1501_v63 }
 0x1b4   : > { %v3367_v44 = vpop.eup %2710  ;;  %2730 = vpow2.f32 %v1130_v56  ;;  %v1107_v21 = vsub.f32 %v3250_v24, %v1083_v27  ;;  %v1484_v45 = vrot.slane %v3307_v43, %v3395_v28  ;;  %v1503_v11 = vsub.f32 %v3176_v16, %v1476_v1 }
 0x1b5   : > { %v3379_v22 = vpop.eup %2712  ;;  %2732 = vpow2.f32 %v1521_v60  ;;  %v1535_v25 = vmul.f32 1.442695, %v1506_v38  ;;  %v1128_v62 = vmul.f32 1.442695, %v1102_v7  ;;  %v1104_v58 = vsub.f32 %v3203_v31, %v1079_v9 }
 0x1b6   : > { %1573 = vperm.xlu0 %2653, %v3367_v44   ;;  %v3381_v6 = vpop.eup %2714  ;;  %2734 = vpow2.f32 %v1531_v35  ;;  %v1138_v59 = vmul.f32 1.442695, %v1107_v21  ;;  %v1508_v24 = vsub.f32 %v3268_v40, %v1484_v45  ;;  %v1529_v48 = vmul.f32 1.442695, %v1503_v11 }
 0x1b7   : > { %1166 = vperm.xlu1 %2654, %v3342_v26   ;;  %v3389_v18 = vpop.eup %2716  ;;  %2736 = vpow2.f32 %v1124_v4  ;;  %v1132_v40 = vmul.f32 1.442695, %v1104_v58  ;;  %v1505_v17 = vsub.f32 %v3233_v50, %v1480_v15  ;;  %v1106_v9 = vsub.f32 %v3258_v30, %v1083_v27 }
 0x1b8   : > { %v3391_v19 = vpop.eup %2718  ;;  %2738 = vpow2.f32 %v1134_v32  ;;  %v1539_v16 = vmul.f32 1.442695, %v1508_v24  ;;  %v1507_v60 = vsub.f32 %v3275_v46, %v1484_v45 }
 0x1b9   : > { %v3402_v36 = vpop.eup %2720  ;;  %2740 = vpow2.f32 %v1525_v2  ;;  %v1533_v56 = vmul.f32 1.442695, %v1505_v17  ;;  %v1136_v50 = vmul.f32 1.442695, %v1106_v9 }
 0x1ba   : > { %1178 = vperm.xlu0 %2653, %v3381_v6   ;;  %v3404_v37 = vpop.eup %2722  ;;  %2742 = vpow2.f32 %v1535_v25  ;;  %v1537_v30 = vmul.f32 1.442695, %v1507_v60 }
 0x1bb   : > { %1558 = vperm.xlu1 %2654, %v3356_v41   ;;  %v3412_v10 = vpop.eup %2724  ;;  %2744 = vpow2.f32 %v1128_v62 }
 0x1bc   : > { %v3414_v39 = vpop.eup %2726  ;;  %2746 = vpow2.f32 %v1138_v59 }
 0x1bd   : > { %v3423_v42 = vpop.eup %2728  ;;  %2748 = vpow2.f32 %v1529_v48 }
 0x1be   : > { %1579 = vperm.xlu0 %2653, %v3391_v19   ;;  %v3425_v29 = vpop.eup %2730  ;;  %2750 = vpow2.f32 %v1539_v16 }
 0x1bf   : > { %1561 = vperm.xlu1 %2654, %v3365_v52   ;;  %3792 = vst [vmem:[#allocation12_spill] sm:$0xff] %v3425_v29  ;;  %v3431_v61 = vpop.eup %2732  ;;  %2752 = vpow2.f32 %v1132_v40 }
 0x1c0   : > { %v3433_v43 = vpop.eup %2734  ;;  %2754 = vpow2.f32 %v1533_v56 }
 0x1c1   : > { %3793 = vst [vmem:[#allocation13_spill] sm:$0xff] %v3433_v43  ;;  %v3438_v1 = vpop.eup %2736  ;;  %2756 = vpow2.f32 %v1136_v50 }
 0x1c2   : > { %1184 = vperm.xlu0 %2653, %v3404_v37   ;;  %v3440_v49 = vpop.eup %2738  ;;  %2758 = vpow2.f32 %v1537_v30 }
 0x1c3   : > { %1564 = vperm.xlu1 %2654, %v3379_v22   ;;  %3794 = vst [vmem:[#allocation14_spill] sm:$0xff] %v3440_v49  ;;  %v3445_v31 = vpop.eup %2740 }
 0x1c4   : > { %v3447_v5 = vpop.eup %2742 }
 0x1c5   : > { %3795 = vst [vmem:[#allocation15_spill] sm:$0xff] %v3447_v5  ;;  %v3452_v33 = vpop.eup %2744 }
 0x1c6   : > { %1585 = vperm.xlu0 %2653, %v3414_v39   ;;  %3796 = vst [vmem:[#allocation16_spill] sm:$0xff] %v3452_v33  ;;  %v3454_v8 = vpop.eup %2746 }
 0x1c7   : > { %1567 = vperm.xlu1 %2654, %v3389_v18   ;;  %3797 = vst [vmem:[#allocation17_spill] sm:$0xff] %v3454_v8  ;;  %v3459_v57 = vpop.eup %2748 }
 0x1c8   : > { %3798 = vst [vmem:[#allocation18_spill] sm:$0xff] %v3459_v57  ;;  %v3461_v15 = vpop.eup %2750 }
 0x1c9   : > { %3799 = vst [vmem:[#allocation19_spill] sm:$0xff] %v3461_v15  ;;  %v3465_v35 = vpop.eup %2752 }
 0x1ca   : > { %1190 = vperm.xlu0 %2653, %v3425_v29   ;;  %3800 = vst [vmem:[#allocation20_spill] sm:$0xff] %v3465_v35  ;;  %v3468_v4 = vpop.eup %2754 }
 0x1cb   : > { %1169 = vperm.xlu1 %2654, %v3402_v36   ;;  %3801 = vst [vmem:[#allocation21_spill] sm:$0xff] %v3468_v4  ;;  %v3471_v46 = vpop.eup %2756 }
 0x1cc   : > { %3802 = vst [vmem:[#allocation22_spill] sm:$0xff] %v3471_v46  ;;  %v3474_v63 = vpop.eup %2758 }
 0x1cd   : > { %3803 = vst [vmem:[#allocation23_spill] sm:$0xff] %v3474_v63 }
 0x1ce   : > { %1591 = vperm.xlu0 %2653, %v3433_v43  }
 0x1cf   : > { %1570 = vperm.xlu1 %2654, %v3412_v10  }
 0x1d2   : > { %1196 = vperm.xlu0 %2653, %v3440_v49  }
 0x1d3   : > { %1175 = vperm.xlu1 %2654, %v3423_v42  }
 0x1d6   : > { %1597 = vperm.xlu0 %2653, %v3447_v5  }
 0x1d7   : > { %1576 = vperm.xlu1 %2654, %v3431_v61  }
 0x1da   : > { %1202 = vperm.xlu0 %2653, %v3454_v8  }
 0x1db   : > { %1181 = vperm.xlu1 %2654, %v3438_v1  }
 0x1de   : > { %1603 = vperm.xlu0 %2653, %v3461_v15  }
 0x1df   : > { %1582 = vperm.xlu1 %2654, %v3445_v31  }
 0x1e3   : > { %1187 = vperm.xlu1 %2654, %v3452_v33  }
 0x1e7   : > { %1588 = vperm.xlu1 %2654, %v3459_v57  }
 0x1eb   : > { %1193 = vperm.xlu1 %2654, %v3465_v35  }
 0x1ef   : > { %1594 = vperm.xlu1 %2654, %v3468_v4  }
 0x1f3   : > { %1199 = vperm.xlu1 %2654, %v3471_v46  }
 0x1f7   : > { %1600 = vperm.xlu1 %2654, %v3474_v63  }
 0x22d   : > { %v1158_v38 = vpop.permute.xlu0 %1157 }
 0x22e   : > { %v1161_v27 = vpop.permute.xlu1 %1160  ;;  %v1207_v5 = vrot.slane %v1158_v38, %v3167_v13 }
 0x22f   : > { %v1211_v46 = vrot.slane %v1161_v27, %v3170_v14 }
 0x231   : > { %v1173_v2 = vpop.permute.xlu0 %1172  ;;  %v1212_v57 = vsel %vm967_vm1, %v1211_v46, %v1207_v5 }
 0x232   : > { %v1164_v32 = vpop.permute.xlu1 %1163  ;;  %v1229_v33 = vrot.slane %v1173_v2, %v3170_v14 }
 0x233   : > { %v1216_v4 = vrot.slane %v1164_v32, %v3167_v13 }
 0x235   : > { %v1574_v25 = vpop.permute.xlu0 %1573 }
 0x236   : > { %v1167_v7 = vpop.permute.xlu1 %1166  ;;  %v1630_v32 = vrot.slane %v1574_v25, %v3170_v14 }
 0x237   : > { %v1220_v8 = vrot.slane %v1167_v7, %v3170_v14 }
 0x239   : > { %v1179_v11 = vpop.permute.xlu0 %1178  ;;  %v1221_v49 = vsel %vm967_vm1, %v1220_v8, %v1216_v4 }
 0x23a   : > { %v1559_v21 = vpop.permute.xlu1 %1558  ;;  %v1276_v7 = vsel %vm1032_vm2, %v1221_v49, %v1212_v57  ;;  %v1238_v5 = vrot.slane %v1179_v11, %v3170_v14 }
 0x23b   : > { %v1608_v8 = vrot.slane %v1559_v21, %v3167_v13 }
 0x23d   : > { %v1580_v24 = vpop.permute.xlu0 %1579 }
 0x23e   : > { %v1562_v45 = vpop.permute.xlu1 %1561 }
 0x23f   : > { %v1612_v53 = vrot.slane %v1562_v45, %v3170_v14  ;;  %v1639_v45 = vrot.slane %v1580_v24, %v3170_v14 }
 0x241   : > { %v1185_v48 = vpop.permute.xlu0 %1184  ;;  %v1613_v57 = vsel %vm967_vm1, %v1612_v53, %v1608_v8 }
 0x242   : > { %v1565_v62 = vpop.permute.xlu1 %1564  ;;  %v1247_v25 = vrot.slane %v1185_v48, %v3170_v14 }
 0x243   : > { %v1617_v4 = vrot.slane %v1565_v62, %v3167_v13 }
 0x245   : > { %v3477_v40 = vpop.permute.xlu0 %1585 }
 0x246   : > { %v1568_v59 = vpop.permute.xlu1 %1567 }
 0x247   : > { %v1621_v27 = vrot.slane %v1568_v59, %v3170_v14 }
 0x249   : > { %v1191_v9 = vpop.permute.xlu0 %1190 }
 0x24a   : > { %v1170_v58 = vpop.permute.xlu1 %1169  ;;  %v1256_v11 = vrot.slane %v1191_v9, %v3170_v14 }
 0x24b   : > { %v1225_v43 = vrot.slane %v1170_v58, %v3167_v13 }
 0x24d   : > { %v1592_v60 = vpop.permute.xlu0 %1591  ;;  %v1230_v46 = vsel %vm967_vm1, %v1229_v33, %v1225_v43 }
 0x24e   : > { %v1571_v16 = vpop.permute.xlu1 %1570 }
 0x24f   : > { %v1626_v2 = vrot.slane %v1571_v16, %v3167_v13 }
 0x251   : > { %v1197_v15 = vpop.permute.xlu0 %1196  ;;  %v1631_v16 = vsel %vm967_vm1, %v1630_v32, %v1626_v2 }
 0x252   : > { %v1176_v17 = vpop.permute.xlu1 %1175  ;;  %v1265_v53 = vrot.slane %v1197_v15, %v3170_v14 }
 0x253   : > { %v1234_v38 = vrot.slane %v1176_v17, %v3167_v13  ;;  %v1622_v17 = vsel %vm967_vm1, %v1621_v27, %v1617_v4  ;;  %v1657_v27 = vrot.slane %v1592_v60, %v3170_v14 }
 0x254   : > { %v1677_v4 = vsel %vm1032_vm2, %v1622_v17, %v1613_v57 }
 0x255   : > { %v1598_v35 = vpop.permute.xlu0 %1597  ;;  %v1239_v43 = vsel %vm967_vm1, %v1238_v5, %v1234_v38 }
 0x256   : > { %v1577_v56 = vpop.permute.xlu1 %1576 }
 0x257   : > { %v1635_v33 = vrot.slane %v1577_v56, %v3167_v13 }
 0x259   : > { %v1203_v59 = vpop.permute.xlu0 %1202 }
 0x25a   : > { %v1182_v50 = vpop.permute.xlu1 %1181 }
 0x25b   : > { %v1243_v58 = vrot.slane %v1182_v50, %v3167_v13 }
 0x25d   : > { %v1248_v24 = vsel %vm967_vm1, %v1247_v25, %v1243_v58  ;;  %v1604_v58 = vpop.permute.xlu0 %1603 }
 0x25e   : > { %v1583_v30 = vpop.permute.xlu1 %1582 }
 0x25f   : > { %v1644_v48 = vrot.slane %v1583_v30, %v3167_v13  ;;  %v1640_v30 = vsel %vm967_vm1, %v1639_v45, %v1635_v33 }
 0x262   : > { %v1188_v63 = vpop.permute.xlu1 %1187 }
 0x263   : > { %v1252_v49 = vrot.slane %v1188_v63, %v3167_v13  ;;  %v1277_v63 = vsel %vm1034_vm3, %v1230_v46, %v1276_v7  ;;  %v1678_v46 = vsel %vm1034_vm3, %v1631_v16, %v1677_v4 }
 0x264   : > { %v1278_v56 = vsel %vm1036_vm4, %v1239_v43, %v1277_v63  ;;  %v1679_v25 = vsel %vm1036_vm4, %v1640_v30, %v1678_v46 }
 0x265   : > { %v1257_v50 = vsel %vm967_vm1, %v1256_v11, %v1252_v49  ;;  %v1279_v8 = vsel %vm1038_vm5, %v1248_v24, %v1278_v56 }
 0x266   : > { %v1589_v28 = vpop.permute.xlu1 %1588  ;;  %v1280_v5 = vsel %vm1040_vm6, %v1257_v50, %v1279_v8 }
 0x267   : > { %v1653_v9 = vrot.slane %v1589_v28, %v3167_v13  ;;  %v1666_v28 = vrot.slane %v1598_v35, %v3170_v14 }
 0x269   : > { %v1658_v2 = vsel %vm967_vm1, %v1657_v27, %v1653_v9 }
 0x26a   : > { %v1194_v29 = vpop.permute.xlu1 %1193 }
 0x26b   : > { %v1261_v21 = vrot.slane %v1194_v29, %v3167_v13  ;;  %v1648_v29 = vrot.slane %v3477_v40, %v3170_v14  ;;  %v1274_v40 = vrot.slane %v1203_v59, %v3170_v14 }
 0x26d   : > { %v1266_v7 = vsel %vm967_vm1, %v1265_v53, %v1261_v21  ;;  %v1649_v60 = vsel %vm967_vm1, %v1648_v29, %v1644_v48 }
 0x26e   : > { %v1595_v62 = vpop.permute.xlu1 %1594  ;;  %v1281_v45 = vsel %vm1042_vm7, %v1266_v7, %v1280_v5  ;;  %v1680_v21 = vsel %vm1038_vm5, %v1649_v60, %v1679_v25 }
 0x26f   : > { %v1662_v15 = vrot.slane %v1595_v62, %v3167_v13  ;;  %v1675_v62 = vrot.slane %v1604_v58, %v3170_v14  ;;  %v1681_v43 = vsel %vm1040_vm6, %v1658_v2, %v1680_v21 }
 0x271   : > { %v1667_v59 = vsel %vm967_vm1, %v1666_v28, %v1662_v15 }
 0x272   : > { %v1200_v38 = vpop.permute.xlu1 %1199  ;;  %v1682_v63 = vsel %vm1042_vm7, %v1667_v59, %v1681_v43 }
 0x273   : > { %v1270_v32 = vrot.slane %v1200_v38, %v3167_v13 }
 0x275   : > { %v1275_v49 = vsel %vm967_vm1, %v1274_v40, %v1270_v32 }
 0x276   : > { %v1601_v57 = vpop.permute.xlu1 %1600  ;;  %v1282_v35 = vsel %vm1044_vm8, %v1275_v49, %v1281_v45 }
 0x277   : > { %v1671_v17 = vrot.slane %v1601_v57, %v3167_v13  ;;  %v1284_v11 = vsel %vm1047_vm9, %v1282_v35, 0.0 }
 0x278   : > { %1285 = vadd.xlane.f32.xlu1 %v1284_v11 }
 0x279   : > { %v1676_v33 = vsel %vm967_vm1, %v1675_v62, %v1671_v17 }
 0x27a   : > { %v1683_v53 = vsel %vm1044_vm8, %v1676_v33, %v1682_v63 }
 0x27b   : > { %v1685_v24 = vsel %vm1047_vm9, %v1683_v53, 0.0 }
 0x27c   : > { %1686 = vadd.xlane.f32.xlu0 %v1685_v24 }
 0x305   : > { %v1286_v48 = vpop.xlane.xlu1 %1285 }
 0x306   : > { %2760 = vrcp.f32 %v1286_v48 }
 0x309   : > { %v1687_v29 = vpop.xlane.xlu0 %1686 }
 0x30a   : > { %2762 = vrcp.f32 %v1687_v29 }
 0x310   : > { %v3544_v16 = vpop.eup %2760 }
 0x311   : > { %v1292_v50 = vrot.slane %v3544_v16, %v2963_v12  ;;  %v1296_v9 = vrot.slane %v3544_v16, %v3289_v20 }
 0x313   : > { %v1329_v27 = vmul.f32 %v3317_v55, %v1292_v50  ;;  %v1330_v56 = vmul.f32 %v3319_v47, %v1292_v50  ;;  %v1331_v7 = vmul.f32 %v3329_v34, %v1296_v9  ;;  %v1332_v15 = vmul.f32 %v3342_v26, %v1296_v9 }
 0x314   : > { %v3554_v38 = vpop.eup %2762  ;;  %v1300_v26 = vrot.slane %v3544_v16, %v3292_v23 }
 0x315   : > { %v1345_v30 = vpack.c.bf16 %v1330_v56, %v1329_v27  ;;  %v1693_v8 = vrot.slane %v3554_v38, %v2963_v12  ;;  %v1346_v40 = vpack.c.bf16 %v1332_v15, %v1331_v7  ;;  %v1697_v28 = vrot.slane %v3554_v38, %v3289_v20 }
 0x316   : > { %v1333_v2 = vmul.f32 %v3402_v36, %v1300_v26  ;;  %v1701_v25 = vrot.slane %v3554_v38, %v3292_v23  ;;  %v1705_v62 = vrot.slane %v3554_v38, %v3313_v54  ;;  %v1709_v9 = vrot.slane %v3554_v38, %v3337_v51 }
 0x317   : > { %v1763_v32 = vunpack.c.h.b16 %v1345_v30  ;;  %v1762_v4 = vunpack.c.l.b16 %v1345_v30  ;;  %v1730_v55 = vmul.f32 %v3356_v41, %v1693_v8  ;;  %v1731_v47 = vmul.f32 %v3365_v52, %v1693_v8 }
 0x318   : > { %v1764_v34 = vunpack.c.l.b16 %v1346_v40  ;;  %v1765_v60 = vunpack.c.h.b16 %v1346_v40  ;;  %v1732_v5 = vmul.f32 %v3379_v22, %v1697_v28  ;;  %v1733_v46 = vmul.f32 %v3389_v18, %v1697_v28 }
 0x319   : > { %1782 = vperm.xlu1 %2654, %v1763_v32   ;;  %1779 = vperm.xlu0 %2653, %v1762_v4   ;;  %v1746_v58 = vpack.c.bf16 %v1731_v47, %v1730_v55  ;;  %v1334_v41 = vmul.f32 %v3331_v0, %v1300_v26  ;;  %v1304_v22 = vrot.slane %v3544_v16, %v3313_v54  ;;  %v3806_v55 = vld [vmem:[#allocation10_spill] sm:$0xff] }
 0x31a   : > { %v1747_v45 = vpack.c.bf16 %v1733_v46, %v1732_v5  ;;  %v1734_v35 = vmul.f32 %v3412_v10, %v1701_v25  ;;  %v1735_v36 = vmul.f32 %v3367_v44, %v1701_v25  ;;  %v1736_v63 = vmul.f32 %v3431_v61, %v1705_v62  ;;  %v3809_v5 = vld [vmem:[#allocation20_spill] sm:$0xff] }
 0x31b   : > { %v1964_v49 = vunpack.c.h.b16 %v1746_v58  ;;  %v1963_v52 = vunpack.c.l.b16 %v1746_v58  ;;  %v1347_v59 = vpack.c.bf16 %v1334_v41, %v1333_v2  ;;  %v1335_v0 = vmul.f32 %v3423_v42, %v1304_v22  ;;  %v3810_v2 = vld [vmem:[#allocation14_spill] sm:$0xff] }
 0x31c   : > { %v1966_v57 = vunpack.c.h.b16 %v1747_v45  ;;  %v1965_v18 = vunpack.c.l.b16 %v1747_v45  ;;  %v1336_v21 = vmul.f32 %v3381_v6, %v1304_v22  ;;  %v1748_v43 = vpack.c.bf16 %v1735_v36, %v1734_v35  ;;  %v3812_v35 = vld [vmem:[#allocation21_spill] sm:$0xff] }
 0x31d   : > { %1785 = vperm.xlu1 %2654, %v1764_v34   ;;  %1788 = vperm.xlu0 %2653, %v1765_v60   ;;  %v1767_v17 = vunpack.c.h.b16 %v1347_v59  ;;  %v1766_v11 = vunpack.c.l.b16 %v1347_v59  ;;  %v1737_v10 = vmul.f32 %v3391_v19, %v1705_v62  ;;  %v1308_v42 = vrot.slane %v3544_v16, %v3337_v51  ;;  %v3807_v34 = vld [vmem:[#allocation18_spill] sm:$0xff]  ;;  %v3808_v60 = vld [vmem:[#allocation13_spill] sm:$0xff]  ;;  %v3811_v59 = vld [vmem:[#allocation11_spill] sm:$0xff] }
 0x31e   : > { %v1348_v33 = vpack.c.bf16 %v1336_v21, %v1335_v0  ;;  %v1968_v44 = vunpack.c.h.b16 %v1748_v43  ;;  %v1967_v53 = vunpack.c.l.b16 %v1748_v43  ;;  %v1312_v61 = vrot.slane %v3544_v16, %v3350_v3  ;;  %v3813_v0 = vld [vmem:[#allocation15_spill] sm:$0xff]  ;;  %v3814_v62 = vld [vmem:[#allocation22_spill] sm:$0xff] }
 0x31f   : > { %v1749_v24 = vpack.c.bf16 %v1737_v10, %v1736_v63  ;;  %v1337_v29 = vmul.f32 %v3438_v1, %v1308_v42  ;;  %v1338_v50 = vmul.f32 %v3404_v37, %v1308_v42  ;;  %v1738_v7 = vmul.f32 %v3445_v31, %v1709_v9  ;;  %v3804_v1 = vld [vmem:[#allocation16_spill] sm:$0xff] }
 0x320   : > { %v1769_v6 = vunpack.c.h.b16 %v1348_v33  ;;  %v1768_v48 = vunpack.c.l.b16 %v1348_v33  ;;  %v1739_v15 = vmul.f32 %v3414_v39, %v1709_v9  ;;  %v1339_v30 = vmul.f32 %v3804_v1, %v1312_v61  ;;  %v3805_v37 = vld [vmem:[#allocation12_spill] sm:$0xff] }
 0x321   : > { %1983 = vperm.xlu0 %2653, %v1964_v49   ;;  %1980 = vperm.xlu1 %2654, %v1963_v52   ;;  %v1970_v19 = vunpack.c.h.b16 %v1749_v24  ;;  %v1969_v27 = vunpack.c.l.b16 %v1749_v24  ;;  %v1349_v56 = vpack.c.bf16 %v1338_v50, %v1337_v29  ;;  %v1340_v8 = vmul.f32 %v3805_v37, %v1312_v61 }
 0x322   : > { %v1750_v32 = vpack.c.bf16 %v1739_v15, %v1738_v7  ;;  %v1713_v4 = vrot.slane %v3554_v38, %v3350_v3  ;;  %v1316_v31 = vrot.slane %v3544_v16, %v3806_v55  ;;  %v1717_v45 = vrot.slane %v3554_v38, %v3806_v55 }
 0x323   : > { %v1771_v40 = vunpack.c.h.b16 %v1349_v56  ;;  %v1770_v51 = vunpack.c.l.b16 %v1349_v56  ;;  %v1350_v28 = vpack.c.bf16 %v1340_v8, %v1339_v30  ;;  %v1320_v22 = vrot.slane %v3544_v16, %v3811_v59  ;;  %v2659_v56 = vld [vmem:[%s429_s26] sm:$0xff]  }
 0x324   : > { %v1972_v47 = vunpack.c.h.b16 %v1750_v32  ;;  %v1971_v39 = vunpack.c.l.b16 %v1750_v32  ;;  %v1740_v26 = vmul.f32 %v3807_v34, %v1713_v4  ;;  %v1741_v58 = vmul.f32 %v3808_v60, %v1713_v4 }
 0x325   : > { %1989 = vperm.xlu0 %2653, %v1966_v57   ;;  %1986 = vperm.xlu1 %2654, %v1965_v18   ;;  %v1341_v46 = vmul.f32 %v3809_v5, %v1316_v31  ;;  %v1342_v41 = vmul.f32 %v3810_v2, %v1316_v31  ;;  %v1773_v49 = vunpack.c.h.b16 %v1350_v28  ;;  %v1772_v3 = vunpack.c.l.b16 %v1350_v28 }
 0x326   : > { %v1751_v52 = vpack.c.bf16 %v1741_v58, %v1740_v26  ;;  %v1742_v36 = vmul.f32 %v3812_v35, %v1717_v45  ;;  %v1743_v21 = vmul.f32 %v3813_v0, %v1717_v45 }
 0x327   : > { %v1351_v25 = vpack.c.bf16 %v1342_v41, %v1341_v46 }
 0x328   : > { %v1974_v57 = vunpack.c.h.b16 %v1751_v52  ;;  %v1973_v18 = vunpack.c.l.b16 %v1751_v52  ;;  %v1752_v10 = vpack.c.bf16 %v1743_v21, %v1742_v36 }
 0x329   : > { %1794 = vperm.xlu0 %2653, %v1767_v17   ;;  %1791 = vperm.xlu1 %2654, %v1766_v11   ;;  %v1343_v17 = vmul.f32 %v3814_v62, %v1320_v22  ;;  %v3815_v11 = vld [vmem:[#allocation17_spill] sm:$0xff]  ;;  %v1775_v33 = vunpack.c.h.b16 %v1351_v25  ;;  %v1774_v63 = vunpack.c.l.b16 %v1351_v25 }
 0x32a   : > { %v1344_v43 = vmul.f32 %v3815_v11, %v1320_v22  ;;  %v1975_v42 = vunpack.c.l.b16 %v1752_v10 }
 0x32c   : > { %v1352_v16 = vpack.c.bf16 %v1344_v43, %v1343_v17 }
 0x32d   : > { %1995 = vperm.xlu0 %2653, %v1968_v44   ;;  %1992 = vperm.xlu1 %2654, %v1967_v53   ;;  %v1721_v44 = vrot.slane %v3554_v38, %v3811_v59  ;;  %v1976_v53 = vunpack.c.h.b16 %v1752_v10  ;;  %v2822_v38 = vmov 0.0  }
 0x32e   : > { %v1777_v50 = vunpack.c.h.b16 %v1352_v16  ;;  %v1776_v9 = vunpack.c.l.b16 %v1352_v16  ;;  %2564 = vmatprep.subr.bf16.mxu0 %v2822_v38  ;;  %2570 = vmatprep.subr.bf16.mxu1 %v2822_v38 }
 0x32f   : > { %2566 = vmatprep.mubr.msk.bf16.mxu0 %vm2823_vm10, %v2822_v38  ;;  %2572 = vmatprep.mubr.msk.bf16.mxu1 %vm2823_vm10, %v2822_v38 }
 0x330   : > { %2565 = vmatpush3.bf16.msra.mxu0 %v2659_v56  ;;  %2571 = vmatpush3.bf16.msra.mxu1 %v2659_v56 }
 0x331   : > { %1800 = vperm.xlu0 %2653, %v1769_v6   ;;  %1797 = vperm.xlu1 %2654, %v1768_v48   ;;  %v3816_v6 = vld [vmem:[#allocation23_spill] sm:$0xff] }
 0x332   : > { %v1744_v24 = vmul.f32 %v3816_v6, %v1721_v44  ;;  %v3817_v48 = vld [vmem:[#allocation19_spill] sm:$0xff]  ;;  %2576 = vmatprep.subr.bf16.mxu0 %v2822_v38  ;;  %2584 = vmatprep.subr.bf16.mxu1 %v2822_v38 }
 0x333   : > { %v1745_v29 = vmul.f32 %v3817_v48, %v1721_v44 }
 0x335   : > { %2001 = vperm.xlu0 %2653, %v1970_v19   ;;  %1998 = vperm.xlu1 %2654, %v1969_v27   ;;  %v1753_v19 = vpack.c.bf16 %v1745_v29, %v1744_v24 }
 0x337   : > { %v1978_v61 = vunpack.c.h.b16 %v1753_v19  ;;  %v1977_v27 = vunpack.c.l.b16 %v1753_v19 }
 0x339   : > { %1806 = vperm.xlu0 %2653, %v1771_v40   ;;  %1803 = vperm.xlu1 %2654, %v1770_v51  }
 0x33d   : > { %2007 = vperm.xlu0 %2653, %v1972_v47   ;;  %2004 = vperm.xlu1 %2654, %v1971_v39  }
 0x341   : > { %1812 = vperm.xlu0 %2653, %v1773_v49   ;;  %1809 = vperm.xlu1 %2654, %v1772_v3  }
 0x345   : > { %2013 = vperm.xlu0 %2653, %v1974_v57   ;;  %2010 = vperm.xlu1 %2654, %v1973_v18  }
 0x349   : > { %1818 = vperm.xlu0 %2653, %v1775_v33   ;;  %1815 = vperm.xlu1 %2654, %v1774_v63  }
 0x34d   : > { %2019 = vperm.xlu0 %2653, %v1976_v53   ;;  %2016 = vperm.xlu1 %2654, %v1975_v42  }
 0x351   : > { %1824 = vperm.xlu0 %2653, %v1777_v50   ;;  %1821 = vperm.xlu1 %2654, %v1776_v9  }
 0x355   : > { %2025 = vperm.xlu0 %2653, %v1978_v61   ;;  %2022 = vperm.xlu1 %2654, %v1977_v27  }
 0x398   : > { %v1783_v7 = vpop.permute.xlu1 %1782  ;;  %v1780_v15 = vpop.permute.xlu0 %1779 }
 0x399   : > { %v1833_v45 = vrot.slane %v1783_v7, %v3170_v14  ;;  %v1829_v25 = vrot.slane %v1780_v15, %v3167_v13 }
 0x39b   : > { %v1834_v43 = vsel %vm967_vm1, %v1833_v45, %v1829_v25 }
 0x39c   : > { %v1786_v1 = vpop.permute.xlu1 %1785  ;;  %v1789_v30 = vpop.permute.xlu0 %1788 }
 0x39d   : > { %v1838_v41 = vrot.slane %v1786_v1, %v3167_v13  ;;  %v1842_v49 = vrot.slane %v1789_v30, %v3170_v14 }
 0x39f   : > { %v1843_v57 = vsel %vm967_vm1, %v1842_v49, %v1838_v41 }
 0x3a0   : > { %v1981_v37 = vpop.permute.xlu1 %1980  ;;  %v1984_v8 = vpop.permute.xlu0 %1983  ;;  %v1898_v6 = vsel %vm1032_vm2, %v1843_v57, %v1834_v43  ;;  %v2660_v57 = vld [vmem:[%s3756_s7] sm:$0xff]   ;;  %v2661_v43 = vld [vmem:[%s3756_s7 + $0x8] sm:$0xff]  }
 0x3a1   : > { %v2030_v18 = vrot.slane %v1981_v37, %v3167_v13  ;;  %v2034_v35 = vrot.slane %v1984_v8, %v3170_v14 }
 0x3a3   : > { %v2035_v24 = vsel %vm967_vm1, %v2034_v35, %v2030_v18 }
 0x3a4   : > { %v1987_v40 = vpop.permute.xlu1 %1986  ;;  %v1990_v51 = vpop.permute.xlu0 %1989 }
 0x3a5   : > { %v2039_v21 = vrot.slane %v1987_v40, %v3167_v13  ;;  %v2043_v62 = vrot.slane %v1990_v51, %v3170_v14 }
 0x3a7   : > { %v2044_v19 = vsel %vm967_vm1, %v2043_v62, %v2039_v21 }
 0x3a8   : > { %v1792_v32 = vpop.permute.xlu1 %1791  ;;  %v1795_v4 = vpop.permute.xlu0 %1794 }
 0x3a9   : > { %v1847_v59 = vrot.slane %v1792_v32, %v3167_v13  ;;  %v1851_v22 = vrot.slane %v1795_v4, %v3170_v14 }
 0x3ab   : > { %v1852_v33 = vsel %vm967_vm1, %v1851_v22, %v1847_v59 }
 0x3ac   : > { %v1993_v28 = vpop.permute.xlu1 %1992  ;;  %v1996_v55 = vpop.permute.xlu0 %1995  ;;  %v1899_v7 = vsel %vm1034_vm3, %v1852_v33, %v1898_v6  ;;  %v2663_v33 = vld [vmem:[%s3757_s8 + $0x8] sm:$0xff]  }
 0x3ad   : > { %v2048_v44 = vrot.slane %v1993_v28, %v3167_v13  ;;  %v2052_v16 = vrot.slane %v1996_v55, %v3170_v14 }
 0x3af   : > { %v2053_v37 = vsel %vm967_vm1, %v2052_v16, %v2048_v44 }
 0x3b0   : > { %v1798_v31 = vpop.permute.xlu1 %1797  ;;  %v1801_v47 = vpop.permute.xlu0 %1800 }
 0x3b1   : > { %v1856_v17 = vrot.slane %v1798_v31, %v3167_v13  ;;  %v1860_v11 = vrot.slane %v1801_v47, %v3170_v14 }
 0x3b3   : > { %v1861_v61 = vsel %vm967_vm1, %v1860_v11, %v1856_v17 }
 0x3b4   : > { %v1999_v39 = vpop.permute.xlu1 %1998  ;;  %v2002_v34 = vpop.permute.xlu0 %2001  ;;  %v1900_v32 = vsel %vm1036_vm4, %v1861_v61, %v1899_v7 }
 0x3b5   : > { %v2057_v27 = vrot.slane %v1999_v39, %v3167_v13  ;;  %v2061_v56 = vrot.slane %v2002_v34, %v3170_v14 }
 0x3b7   : > { %v2062_v39 = vsel %vm967_vm1, %v2061_v56, %v2057_v27 }
 0x3b8   : > { %v1804_v26 = vpop.permute.xlu1 %1803  ;;  %v1807_v60 = vpop.permute.xlu0 %1806 }
 0x3b9   : > { %v1865_v63 = vrot.slane %v1804_v26, %v3167_v13  ;;  %v1869_v10 = vrot.slane %v1807_v60, %v3170_v14 }
 0x3bb   : > { %v1870_v15 = vsel %vm967_vm1, %v1869_v10, %v1865_v63  ;;  %v2824_v63 = vmov 1  }
 0x3bc   : > { %v2005_v58 = vpop.permute.xlu1 %2004  ;;  %v2008_v5 = vpop.permute.xlu0 %2007  ;;  %v1901_v34 = vsel %vm1038_vm5, %v1870_v15, %v1900_v32  ;;  %2655 = vset.pattern.permute.xlu0 %v2824_v63 }
 0x3bd   : > { %v2066_v1 = vrot.slane %v2005_v58, %v3167_v13  ;;  %v2070_v30 = vrot.slane %v2008_v5, %v3170_v14  ;;  %v2099_v58 = vsel %vm1032_vm2, %v2044_v19, %v2035_v24 }
 0x3bf   : > { %v2071_v5 = vsel %vm967_vm1, %v2070_v30, %v2066_v1  ;;  %v2270_v1 = vld [vmem:[%s459_s14] sm:$0xf] }
 0x3c0   : > { %v1810_v46 = vpop.permute.xlu1 %1809  ;;  %v1813_v2 = vpop.permute.xlu0 %1812  ;;  %v2289_v30 = vrot.slane %v2270_v1, %v3289_v20 }
 0x3c1   : > { %v1874_v53 = vrot.slane %v1810_v46, %v3167_v13  ;;  %v1878_v42 = vrot.slane %v1813_v2, %v3170_v14  ;;  %v2100_v2 = vsel %vm1034_vm3, %v2053_v37, %v2099_v58  ;;  %v2279_v37 = vrot.slane %v2270_v1, %v2963_v12 }
 0x3c3   : > { %v1879_v8 = vsel %vm967_vm1, %v1878_v42, %v1874_v53 }
 0x3c4   : > { %v2011_v3 = vpop.permute.xlu1 %2010  ;;  %v2014_v52 = vpop.permute.xlu0 %2013  ;;  %v1902_v46 = vsel %vm1040_vm6, %v1879_v8, %v1901_v34 }
 0x3c5   : > { %v2075_v40 = vrot.slane %v2011_v3, %v3167_v13  ;;  %v2079_v51 = vrot.slane %v2014_v52, %v3170_v14  ;;  %v2101_v52 = vsel %vm1036_vm4, %v2062_v39, %v2100_v2 }
 0x3c6   : > { %v2102_v18 = vsel %vm1038_vm5, %v2071_v5, %v2101_v52 }
 0x3c7   : > { %v2080_v41 = vsel %vm967_vm1, %v2079_v51, %v2075_v40 }
 0x3c8   : > { %v1816_v36 = vpop.permute.xlu1 %1815  ;;  %v1819_v0 = vpop.permute.xlu0 %1818  ;;  %v2103_v21 = vsel %vm1040_vm6, %v2080_v41, %v2102_v18 }
 0x3c9   : > { %v1883_v48 = vrot.slane %v1816_v36, %v3167_v13  ;;  %v1887_v29 = vrot.slane %v1819_v0, %v3170_v14 }
 0x3cb   : > { %v1888_v4 = vsel %vm967_vm1, %v1887_v29, %v1883_v48 }
 0x3cc   : > { %v2017_v50 = vpop.permute.xlu1 %2016  ;;  %v2020_v9 = vpop.permute.xlu0 %2019  ;;  %v1903_v49 = vsel %vm1042_vm7, %v1888_v4, %v1902_v46  ;;  %v2301_v4 = vrot.slane %v2270_v1, %v3292_v23 }
 0x3cd   : > { %v2084_v28 = vrot.slane %v2017_v50, %v3167_v13  ;;  %v2088_v55 = vrot.slane %v2020_v9, %v3170_v14 }
 0x3cf   : > { %v2089_v45 = vsel %vm967_vm1, %v2088_v55, %v2084_v28 }
 0x3d0   : > { %v1822_v31 = vpop.permute.xlu1 %1821  ;;  %v1825_v47 = vpop.permute.xlu0 %1824  ;;  %v2104_v62 = vsel %vm1042_vm7, %v2089_v45, %v2103_v21 }
 0x3d1   : > { %v1892_v26 = vrot.slane %v1822_v31, %v3167_v13  ;;  %v1896_v60 = vrot.slane %v1825_v47, %v3170_v14  ;;  %v2312_v31 = vrot.slane %v2270_v1, %v3313_v54 }
 0x3d3   : > { %v1897_v3 = vsel %vm967_vm1, %v1896_v60, %v1892_v26 }
 0x3d4   : > { %v1904_v25 = vsel %vm1044_vm8, %v1897_v3, %v1903_v49  ;;  %v2023_v59 = vpop.permute.xlu1 %2022  ;;  %v2026_v22 = vpop.permute.xlu0 %2025 }
 0x3d5   : > { %v2093_v35 = vrot.slane %v2023_v59, %v3167_v13  ;;  %v2097_v36 = vrot.slane %v2026_v22, %v3170_v14  ;;  %v1905_v0 = vpack.c.b16 %v1904_v25, %v1904_v25  ;;  %v2662_v13 = vld [vmem:[%s3757_s8] sm:$0xff]  }
 0x3d7   : > { %v2098_v17 = vsel %vm967_vm1, %v2097_v36, %v2093_v35  ;;  %2567 = vmatmul.mubr.msk.bf16.vlgmr.msra.gmra.mrb[0].mxu0 %vm1047_vm9, %v1905_v0 }
 0x3d8   : > { %v2105_v11 = vsel %vm1044_vm8, %v2098_v17, %v2104_v62  ;;  %2577 = vmatpush3.bf16.msra.mxu0 %v2660_v57  ;;  %2580 = vmatprep.mubr.msk.bf16.mxu0 %vm2823_vm10, %v2822_v38 }
 0x3d9   : > { %v2106_v14 = vpack.c.b16 %v2105_v11, %v2105_v11  ;;  %2578 = vmatprep.subr.bf16.mxu0 %v2822_v38 }
 0x3db   : > { %2573 = vmatmul.mubr.msk.bf16.vlgmr.msra.gmra.mrb[0].mxu1 %vm1047_vm9, %v2106_v14 }
 0x3dc   : > { %2579 = vmatpush3.bf16.msra.mxu0 %v2661_v43  ;;  %2585 = vmatpush3.bf16.msra.mxu1 %v2662_v13 }
 0x3dd   : > { %2586 = vmatprep.subr.bf16.mxu1 %v2822_v38  ;;  %2588 = vmatprep.mubr.msk.bf16.mxu1 %vm2823_vm10, %v2822_v38 }
 0x3e0   : > { %2587 = vmatpush3.bf16.msra.mxu1 %v2663_v33 }
 0x4aa   : > { %v1949_v10 = vpop.f32.mrb[0].mxu0 }
 0x4ab   : > { %v2150_v44 = vpack.c.bf16 %v1949_v10, %v1949_v10  ;;  %v2568_v16 = vpop.f32.mrb[1].mxu0 }
 0x4ac   : > { %v1952_v53 = vpop.f32.mrb[2].mxu0 }
 0x4ad   : > { %v2569_v42 = vpop.f32.mrb[3].mxu0  ;;  %2581 = vmatmul.mubr.msk.bf16.vlgmr.msra.gmra.mrb[4].mxu0 %vm811_vm0, %v2150_v44 }
 0x4ae   : > { %v2144_v6 = vpop.f32.mrb[0].mxu1 }
 0x4af   : > { %v2210_v24 = vpack.c.bf16 %v2144_v6, %v2144_v6  ;;  %v2574_v48 = vpop.f32.mrb[1].mxu1 }
 0x4b0   : > { %v2147_v29 = vpop.f32.mrb[2].mxu1 }
 0x4b1   : > { %v2575_v38 = vpop.f32.mrb[3].mxu1  ;;  %2589 = vmatmul.mubr.msk.bf16.vlgmr.msra.gmra.mrb[4].mxu1 %vm811_vm0, %v2210_v24 }
 0x580   : > { %v2204_v50 = vpop.f32.mrb[4].mxu0 }
 0x581   : > { %2283 = vperm.xlu0 %2655, %v2204_v50   ;;  %2273 = vperm.xlu1 %2654, %v2204_v50   ;;  %v2582_v9 = vpop.f32.mrb[5].mxu0 }
 0x582   : > { %v2207_v19 = vpop.f32.mrb[6].mxu0 }
 0x583   : > { %v2583_v61 = vpop.f32.mrb[7].mxu0 }
 0x584   : > { %v2264_v27 = vpop.f32.mrb[4].mxu1 }
 0x585   : > { %v2590_v56 = vpop.f32.mrb[5].mxu1  ;;  %2295 = vperm.xlu1 %2654, %v2264_v27  }
 0x586   : > { %v2267_v7 = vpop.f32.mrb[6].mxu1 }
 0x587   : > { %v2591_v15 = vpop.f32.mrb[7].mxu1 }
 0x589   : > { %2656 = vset.pattern.permute.xlu1 %v2824_v63 }
 0x58a   : > { %2306 = vperm.xlu1 %2656, %v2264_v27  }
 0x600   : > { %v2284_v8 = vpop.permute.xlu0 %2283  ;;  %v2274_v40 = vpop.permute.xlu1 %2273 }
 0x601   : > { %v2290_v51 = vadd.f32 %v2289_v30, %v2284_v8  ;;  %v2280_v32 = vadd.f32 %v2279_v37, %v2274_v40 }
 0x603   : > { %2543 = vst.msk [vmem:[%s424_s17 + $0x8] sm:$0xff] %vm1047_vm9, %v2290_v51  ;;  %2281 = vst.msk [vmem:[%s424_s17] sm:$0xff] %vm1047_vm9, %v2280_v32 }
 0x604   : > { %v2296_v28 = vpop.permute.xlu1 %2295 }
 0x605   : > { %v2302_v55 = vadd.f32 %v2301_v4, %v2296_v28 }
 0x606   : > { %2322 = sbr.rel (!%p2921_p5) target bundleno = 1557 (0x615), region = 60 }
 0x607   : > { %2544 = vst.msk [vmem:[%s424_s17 + $0x10] sm:$0xff] %vm1047_vm9, %v2302_v55 }
 0x609   : > { %v2307_v20 = vpop.permute.xlu1 %2306 }
 0x60a   : > { %v2313_v47 = vadd.f32 %v2312_v31, %v2307_v20  ;;  %v2360_v12 = vld [vmem:[%s424_s17] sm:$0xff] (%p2921_p5)  ;;  %v2362_v23 = vld [vmem:[%s424_s17 + $0x8] sm:$0xff] (%p2921_p5) }
 0x60b   : > { %2361 = vst [vmem:[%s2326_s29] sm:$0xff] (%p2921_p5), %v2360_v12  ;;  %2363 = vst [vmem:[%s2326_s29 + $0x10] sm:$0xff] (%p2921_p5), %v2362_v23 }
 0x60c   : > { %2545 = vst.msk [vmem:[%s424_s17 + $0x18] sm:$0xff] %vm1047_vm9, %v2313_v47 }
 0x60e   : > { %v2364_v39 = vld [vmem:[%s424_s17 + $0x10] sm:$0xff] }
 0x60f   : > { %2365 = vst [vmem:[%s2326_s29 + $0x20] sm:$0xff] %v2364_v39 }
 0x613   : > { %v2366_v34 = vld [vmem:[%s424_s17 + $0x18] sm:$0xff] }
 0x614   : > { %2367 = vst [vmem:[%s2326_s29 + $0x30] sm:$0xff] %v2366_v34 }
 0x615 PF: > { %s3819_s20 = sld [smem:[#allocation6_spill]]  ;;  %s3820_s30 = sld [smem:[#allocation3_spill]] }
 0x616   : > { %s3821_s10 = sld [smem:[#allocation9_spill]]  ;;  %s3822_s11 = sld [smem:[#allocation4_spill]] }
 0x617   : > { %s3823_s12 = sld [smem:[#allocation5_spill]]  ;;  %s3824_s13 = sld [smem:[#allocation7_spill]] }
 0x618   : > { %s3825_s14 = sld [smem:[#allocation8_spill]] }
 0x61b   : > { %s19_s15 = sadd.s32 1, %s3819_s20  }
 0x61c   : > { %p16_p11 = scmp.ge.s32.totalorder %s19_s15, 6  }
 0x61e   :  { %18 = sbr.rel (!%p16_p11) target bundleno = 6 (0x6), region = 142 }

</bundles_post_ra>
